<compile_context>
chip_gen: v5e
topology: v5e:2x2
jax: 0.10.0
libtpu: 0.0.40
codegen_flags: <defaults>
</compile_context>

<pallas_src>
import jax
import jax.numpy as jnp
from jax.experimental import pallas as pl
from jax.experimental.pallas import tpu as pltpu

MIB = 1024 * 1024


# ---------------------------------------------------------------------------
# Hardware-aware sizing helpers
# ---------------------------------------------------------------------------
def _vmem_capacity_bytes():
    """Physical VMEM per TensorCore (64 MiB on v7x, 128 MiB on v5e/v6e)."""
    try:
        cap = getattr(pltpu.get_tpu_info(), "vmem_capacity_bytes", None)
        if cap:
            return int(cap)
    except Exception:
        pass
    return 64 * MIB  # conservative (v7x)


def _vmem_limit(cap):
    # Leave headroom for compiler-internal scratch; never exceed 96 MiB.
    return int(min((cap * 3) // 4, 96 * MIB))


def _pick_bb(B):
    # Prefer >= 2 batch steps (v7x megacore + pipelining); block batch dim must
    # be a multiple of 8 or equal to the full batch (for the (Bb, L) emb block).
    if B % 16 == 0 and B > 16:
        return 16
    if B % 8 == 0:
        return 8
    return B


def _pick_nt(N, Bb, budget_bytes):
    # Choose the point-tile so the per-step VMEM footprint (double-buffered
    # point_features tile + live activations) fits the budget.
    if N % 128 != 0:
        return N  # full-extent fallback
    per_point = 4608  # ~bytes/point/step: pf(2x256x4) + h3/h2/h1/h1t + x tile
    max_pts = max(budget_bytes // max(Bb * per_point, 1), 128)
    cands = [nt for nt in range(128, N + 1, 128) if N % nt == 0 and nt <= max_pts]
    if not cands:
        return 128
    multi = [nt for nt in cands if N // nt >= 2]  # prefer >= 2 pipeline steps
    if multi and max(multi) >= 256:
        return max(multi)
    return max(cands)


def _pick_tn(total, cap):
    # fc3 output-column tile: bigger on v5e/v6e (128 MiB VMEM), capped on v7x.
    max_tn = 2048 if cap > 96 * MIB else 1024
    for tn in (2048, 1536, 1024, 768, 512, 384, 256, 128):
        if tn <= max_tn and total % tn == 0 and total // tn >= 2:
            return tn, total
    for tn in (1024, 512, 384, 256, 128):
        if tn <= max_tn and total % tn == 0:
            return tn, total
    tn = min(max_tn, 512)
    padded = -(-total // tn) * tn  # pad in the wrapper; sliced off afterwards
    return tn, padded


# ---------------------------------------------------------------------------
# Encoder kernel: shared MLP (tiled over points) + running max + projection
# ---------------------------------------------------------------------------
def encoder_kernel(xt_ref, w1t_ref, b1t_ref, w2_ref, b2_ref, w3_ref, b3_ref,
                   wp_ref, bp_ref, pf_ref, emb_ref, gmax_ref):
    n_idx = pl.program_id(1)
    Bb, _, Nt = xt_ref.shape

    @pl.when(n_idx == 0)
    def _():
        gmax_ref[...] = jnp.full_like(gmax_ref, -jnp.inf)

    xt = xt_ref[...]          # (Bb, 3, Nt)  channels-first, points on lanes
    w1c = w1t_ref[...]        # (64, 3)
    b1c = b1t_ref[...]        # (64, 1)

    # Layer 1 (3 -> 64): K=3 contraction on the VPU (broadcast FMAs).
    h1t = (w1c[:, 0:1][None] * xt[:, 0:1, :]
           + w1c[:, 1:2][None] * xt[:, 1:2, :]
           + w1c[:, 2:3][None] * xt[:, 2:3, :]
           + b1c[None])
    h1t = jnp.maximum(h1t, 0.0)                         # (Bb, 64, Nt)

    # Switch to points-on-sublanes for big-M MXU matmuls (small 64-ch transpose).
    h1 = jnp.transpose(h1t, (0, 2, 1)).reshape(Bb * Nt, 64)

    # Layers 2/3: bf16 operands, f32 accumulate.
    h2 = jnp.dot(h1.astype(jnp.bfloat16), w2_ref[...],
                 preferred_element_type=jnp.float32) + b2_ref[...]
    h2 = jnp.maximum(h2, 0.0)                           # (Bb*Nt, 128)
    h3 = jnp.dot(h2.astype(jnp.bfloat16), w3_ref[...],
                 preferred_element_type=jnp.float32) + b3_ref[...]
    h3 = jnp.maximum(h3, 0.0)                           # (Bb*Nt, 256)

    h3b = h3.reshape(Bb, Nt, 256)
    pf_ref[...] = h3b                                   # point_features tile
    gmax_ref[...] = jnp.maximum(gmax_ref[...], jnp.max(h3b, axis=1))

    # Final 256 -> latent projection once per batch tile (last point tile).
    @pl.when(n_idx == pl.num_programs(1) - 1)
    def _():
        g = gmax_ref[...].astype(jnp.bfloat16)
        emb_ref[...] = (jnp.dot(g, wp_ref[...],
                                preferred_element_type=jnp.float32)
                        + bp_ref[...])


def pointnet_encoder(x, p):
    B, N, _ = x.shape
    L = p["wp"].shape[1]
    cap = _vmem_capacity_bytes()
    Bb = _pick_bb(B)
    Nt = _pick_nt(N, Bb, cap // 3)

    # Channels-first input: sublane pad 3->8 only, long lane-dense DMA rows.
    xt = jnp.transpose(x, (0, 2, 1))                    # (B, 3, N), tiny tensor
    w1t = jnp.transpose(p["w1"])                        # (64, 3)
    b1t = jnp.transpose(p["b1"])                        # (64, 1)
    w2 = p["w2"].astype(jnp.bfloat16)
    w3 = p["w3"].astype(jnp.bfloat16)
    wp = p["wp"].astype(jnp.bfloat16)

    def const(shape):
        return pl.BlockSpec(shape, lambda b, n: (0,) * len(shape))

    pf, emb = pl.pallas_call(
        encoder_kernel,
        grid=(B // Bb, N // Nt),
        in_specs=[
            pl.BlockSpec((Bb, 3, Nt), lambda b, n: (b, 0, n)),
            const((64, 3)), const((64, 1)),
            const((64, 128)), const((1, 128)),
            const((128, 256)), const((1, 256)),
            const((256, L)), const((1, L)),
        ],
        out_specs=[
            pl.BlockSpec((Bb, Nt, 256), lambda b, n: (b, n, 0)),
            pl.BlockSpec((Bb, L), lambda b, n: (b, 0)),
        ],
        out_shape=[
            jax.ShapeDtypeStruct((B, N, 256), jnp.float32),
            jax.ShapeDtypeStruct((B, L), jnp.float32),
        ],
        scratch_shapes=[pltpu.VMEM((Bb, 256), jnp.float32)],
        compiler_params=pltpu.CompilerParams(
            dimension_semantics=("parallel", "arbitrary"),
            vmem_limit_bytes=_vmem_limit(cap),
        ),
    )(xt, w1t, b1t, w2, p["b2"], w3, p["b3"], wp, p["bp"])
    return emb, pf


# ---------------------------------------------------------------------------
# Decoder stage 1: fc1 -> BN -> ReLU -> fc2 -> BN -> ReLU   (single step)
# ---------------------------------------------------------------------------
def decoder_hidden_kernel(z_ref, w1_ref, b1_ref, g1_ref, be1_ref,
                          w2_ref, b2_ref, g2_ref, be2_ref, h_ref):
    eps = 1e-5

    def bn_relu(h, gamma, beta):
        mean = jnp.mean(h, axis=0, keepdims=True)
        var = jnp.mean((h - mean) ** 2, axis=0, keepdims=True)   # biased var
        h = (h - mean) * jax.lax.rsqrt(var + eps) * gamma + beta
        return jnp.maximum(h, 0.0)

    h = jnp.dot(z_ref[...].astype(jnp.bfloat16), w1_ref[...],
                preferred_element_type=jnp.float32) + b1_ref[...]
    h = bn_relu(h, g1_ref[...], be1_ref[...])
    h = jnp.dot(h.astype(jnp.bfloat16), w2_ref[...],
                preferred_element_type=jnp.float32) + b2_ref[...]
    h = bn_relu(h, g2_ref[...], be2_ref[...])
    h_ref[...] = h.astype(h_ref.dtype)


# ---------------------------------------------------------------------------
# Decoder stage 2: fc3 streamed over output-column tiles (parallel grid axis)
# ---------------------------------------------------------------------------
def decoder_fc3_kernel(h_ref, w_ref, b_ref, out_ref):
    out_ref[...] = (jnp.dot(h_ref[...], w_ref[...],
                            preferred_element_type=jnp.float32) + b_ref[...])


def pointnet_fc_decoder(z, p, num_point):
    B, L = z.shape
    cap = _vmem_capacity_bytes()
    limit = _vmem_limit(cap)

    def const1(shape):
        return pl.BlockSpec(shape, lambda i: (0,) * len(shape))

    # Stage 1: h = fc2(bn(relu(fc1(z)))) ... -> (B, 1024) bf16 intermediate.
    h = pl.pallas_call(
        decoder_hidden_kernel,
        grid=(1,),
        in_specs=[
            const1((B, L)),
            const1((L, 1024)), const1((1, 1024)), const1((1, 1024)), const1((1, 1024)),
            const1((1024, 1024)), const1((1, 1024)), const1((1, 1024)), const1((1, 1024)),
        ],
        out_specs=const1((B, 1024)),
        out_shape=jax.ShapeDtypeStruct((B, 1024), jnp.bfloat16),
        compiler_params=pltpu.CompilerParams(
            dimension_semantics=("arbitrary",),
            vmem_limit_bytes=limit,
        ),
    )(z, p["fc1_w"].astype(jnp.bfloat16), p["fc1_b"], p["bn1_g"], p["bn1_b"],
      p["fc2_w"].astype(jnp.bfloat16), p["fc2_b"], p["bn2_g"], p["bn2_b"])

    # Stage 2: fc3 column streaming (bf16 weight stream, f32 accumulate).
    total = num_point * 3
    TN, padded = _pick_tn(total, cap)
    w3 = p["fc3_w"].astype(jnp.bfloat16)
    b3 = p["fc3_b"]
    if padded != total:
        w3 = jnp.pad(w3, ((0, 0), (0, padded - total)))
        b3 = jnp.pad(b3, ((0, 0), (0, padded - total)))

    out_flat = pl.pallas_call(
        decoder_fc3_kernel,
        grid=(padded // TN,),
        in_specs=[
            pl.BlockSpec((B, 1024), lambda j: (0, 0)),
            pl.BlockSpec((1024, TN), lambda j: (0, j)),
            pl.BlockSpec((1, TN), lambda j: (0, j)),
        ],
        out_specs=pl.BlockSpec((B, TN), lambda j: (0, j)),
        out_shape=jax.ShapeDtypeStruct((B, padded), jnp.float32),
        compiler_params=pltpu.CompilerParams(
            dimension_semantics=("parallel",),
            vmem_limit_bytes=limit,
        ),
    )(h, w3, b3)

    if padded != total:
        out_flat = out_flat[:, :total]
    return out_flat.reshape(B, num_point, 3)


# ---------------------------------------------------------------------------
# Full autoencoder
# ---------------------------------------------------------------------------
def pointnet_ae(point_cloud, params, num_point):
    embedding, point_features = pointnet_encoder(point_cloud, params["enc"])
    reconstructed = pointnet_fc_decoder(embedding, params["dec"], num_point)
    end_points = {"point_features": point_features, "embedding": embedding}
    return reconstructed, end_points


# ---------------------------------------------------------------------------
# Deterministic parameter init (PyTorch nn.Linear-style uniform; BN gamma=1, beta=0)
# ---------------------------------------------------------------------------
def _linear(key, fan_in, fan_out):
    kw, kb = jax.random.split(key)
    bound = 1.0 / jnp.sqrt(fan_in)
    w = jax.random.uniform(kw, (fan_in, fan_out), jnp.float32, -bound, bound)
    b = jax.random.uniform(kb, (1, fan_out), jnp.float32, -bound, bound)
    return w, b


def init_params(key, latent_dim, num_point):
    keys = jax.random.split(key, 8)
    w1, b1 = _linear(keys[0], 3, 64)
    w2, b2 = _linear(keys[1], 64, 128)
    w3, b3 = _linear(keys[2], 128, 256)
    wp, bp = _linear(keys[3], 256, latent_dim)
    fc1_w, fc1_b = _linear(keys[4], latent_dim, 1024)
    fc2_w, fc2_b = _linear(keys[5], 1024, 1024)
    fc3_w, fc3_b = _linear(keys[6], 1024, num_point * 3)
    ones = jnp.ones((1, 1024), jnp.float32)
    zeros = jnp.zeros((1, 1024), jnp.float32)
    return {
        "enc": {"w1": w1, "b1": b1, "w2": w2, "b2": b2, "w3": w3, "b3": b3,
                "wp": wp, "bp": bp},
        "dec": {"fc1_w": fc1_w, "fc1_b": fc1_b, "bn1_g": ones, "bn1_b": zeros,
                "fc2_w": fc2_w, "fc2_b": fc2_b, "bn2_g": ones, "bn2_b": zeros,
                "fc3_w": fc3_w, "fc3_b": fc3_b},
    }


if __name__ == "__main__":
    B = 2            # batch
    N = 128          # input points
    NUM_POINT = 128  # reconstructed points
    LATENT = 256     # latent dim

    key = jax.random.PRNGKey(0)
    k_param, k_data = jax.random.split(key)
    params = init_params(k_param, LATENT, NUM_POINT)
    point_cloud = jax.random.normal(k_data, (B, N, 3), jnp.float32)

    recon, end_points = pointnet_ae(point_cloud, params, NUM_POINT)
    jax.block_until_ready((recon, end_points))

    assert recon.shape == (B, NUM_POINT, 3)
    assert end_points["embedding"].shape == (B, LATENT)
    assert end_points["point_features"].shape == (B, N, 256)
    print("KERNEL_OK")
</pallas_src>

<mosaic_0001>
module attributes {stable_mosaic.version = 11 : i64} {
  func.func @encoder_kernel(%arg0: i32, %arg1: i32, %arg2: memref<2x3x128xf32, #tpu.memory_space<vmem>>, %arg3: memref<64x3xf32, #tpu.memory_space<vmem>>, %arg4: memref<64x1xf32, #tpu.memory_space<vmem>>, %arg5: memref<64x128xbf16, #tpu.memory_space<vmem>>, %arg6: memref<1x128xf32, #tpu.memory_space<vmem>>, %arg7: memref<128x256xbf16, #tpu.memory_space<vmem>>, %arg8: memref<1x256xf32, #tpu.memory_space<vmem>>, %arg9: memref<256x256xbf16, #tpu.memory_space<vmem>>, %arg10: memref<1x256xf32, #tpu.memory_space<vmem>>, %arg11: memref<2x128x256xf32, #tpu.memory_space<vmem>>, %arg12: memref<2x256xf32, #tpu.memory_space<vmem>>, %arg13: memref<2x256xf32, #tpu.memory_space<vmem>>) attributes {dimension_semantics = [#tpu.dimension_semantics<parallel>, #tpu.dimension_semantics<arbitrary>], iteration_bounds = array<i64: 1, 1>, scalar_prefetch = 0 : i64, scratch_operands = 1 : i64, tpu.core_type = #tpu.core_type<tc>, window_params = [{transform_indices = @transform_0, window_bounds = array<i64: 2, 3, 128>}, {pipeline_mode = #tpu.pipeline_mode<synchronous>, transform_indices = @transform_1, window_bounds = array<i64: 64, 3>}, {pipeline_mode = #tpu.pipeline_mode<synchronous>, transform_indices = @transform_2, window_bounds = array<i64: 64, 1>}, {pipeline_mode = #tpu.pipeline_mode<synchronous>, transform_indices = @transform_3, window_bounds = array<i64: 64, 128>}, {pipeline_mode = #tpu.pipeline_mode<synchronous>, transform_indices = @transform_4, window_bounds = array<i64: 1, 128>}, {pipeline_mode = #tpu.pipeline_mode<synchronous>, transform_indices = @transform_5, window_bounds = array<i64: 128, 256>}, {pipeline_mode = #tpu.pipeline_mode<synchronous>, transform_indices = @transform_6, window_bounds = array<i64: 1, 256>}, {pipeline_mode = #tpu.pipeline_mode<synchronous>, transform_indices = @transform_7, window_bounds = array<i64: 256, 256>}, {pipeline_mode = #tpu.pipeline_mode<synchronous>, transform_indices = @transform_8, window_bounds = array<i64: 1, 256>}, {transform_indices = @transform_9, window_bounds = array<i64: 2, 128, 256>}, {transform_indices = @transform_10, window_bounds = array<i64: 2, 256>}]} {
    %c0_i32 = arith.constant 0 : i32
    %0 = arith.cmpi eq, %arg1, %c0_i32 : i32
    %1 = arith.extui %0 : i1 to i32
    %c0_i32_0 = arith.constant 0 : i32
    %2 = arith.cmpi ne, %1, %c0_i32_0 : i32
    scf.if %2 {
      %cst_29 = arith.constant 0xFF800000 : f32
      %58 = vector.broadcast %cst_29 : f32 to vector<2x256xf32>
      %c0_30 = arith.constant 0 : index
      %c0_31 = arith.constant 0 : index
      %59 = vector.load %arg13[%c0_30, %c0_31] : memref<2x256xf32, #tpu.memory_space<vmem>>, vector<2x256xf32>
      tpu.vector_store %arg13[%c0_30, %c0_31], %58 {strides = array<i32>} : memref<2x256xf32, #tpu.memory_space<vmem>>, vector<2x256xf32>,
    } else {
    }
    %c0 = arith.constant 0 : index
    %c0_1 = arith.constant 0 : index
    %c0_2 = arith.constant 0 : index
    %3 = vector.load %arg2[%c0, %c0_1, %c0_2] : memref<2x3x128xf32, #tpu.memory_space<vmem>>, vector<2x3x128xf32>
    %c0_3 = arith.constant 0 : index
    %c0_4 = arith.constant 0 : index
    %4 = vector.load %arg3[%c0_3, %c0_4] : memref<64x3xf32, #tpu.memory_space<vmem>>, vector<64x3xf32>
    %c0_5 = arith.constant 0 : index
    %c0_6 = arith.constant 0 : index
    %5 = vector.load %arg4[%c0_5, %c0_6] : memref<64x1xf32, #tpu.memory_space<vmem>>, vector<64x1xf32>
    %6 = vector.extract_strided_slice %4 {offsets = [0, 0], sizes = [64, 1], strides = [1, 1]} : vector<64x3xf32> to vector<64x1xf32>
    %7 = vector.shape_cast %6 : vector<64x1xf32> to vector<1x64x1xf32>
    %8 = vector.extract_strided_slice %3 {offsets = [0, 0, 0], sizes = [2, 1, 128], strides = [1, 1, 1]} : vector<2x3x128xf32> to vector<2x1x128xf32>
    %9 = vector.broadcast %7 : vector<1x64x1xf32> to vector<2x64x128xf32>
    %10 = vector.broadcast %8 : vector<2x1x128xf32> to vector<2x64x128xf32>
    %11 = arith.mulf %9, %10 : vector<2x64x128xf32>
    %12 = vector.extract_strided_slice %4 {offsets = [0, 1], sizes = [64, 1], strides = [1, 1]} : vector<64x3xf32> to vector<64x1xf32>
    %13 = vector.shape_cast %12 : vector<64x1xf32> to vector<1x64x1xf32>
    %14 = vector.extract_strided_slice %3 {offsets = [0, 1, 0], sizes = [2, 1, 128], strides = [1, 1, 1]} : vector<2x3x128xf32> to vector<2x1x128xf32>
    %15 = vector.broadcast %13 : vector<1x64x1xf32> to vector<2x64x128xf32>
    %16 = vector.broadcast %14 : vector<2x1x128xf32> to vector<2x64x128xf32>
    %17 = arith.mulf %15, %16 : vector<2x64x128xf32>
    %18 = arith.addf %11, %17 : vector<2x64x128xf32>
    %19 = vector.extract_strided_slice %4 {offsets = [0, 2], sizes = [64, 1], strides = [1, 1]} : vector<64x3xf32> to vector<64x1xf32>
    %20 = vector.shape_cast %19 : vector<64x1xf32> to vector<1x64x1xf32>
    %21 = vector.extract_strided_slice %3 {offsets = [0, 2, 0], sizes = [2, 1, 128], strides = [1, 1, 1]} : vector<2x3x128xf32> to vector<2x1x128xf32>
    %22 = vector.broadcast %20 : vector<1x64x1xf32> to vector<2x64x128xf32>
    %23 = vector.broadcast %21 : vector<2x1x128xf32> to vector<2x64x128xf32>
    %24 = arith.mulf %22, %23 : vector<2x64x128xf32>
    %25 = arith.addf %18, %24 : vector<2x64x128xf32>
    %26 = vector.shape_cast %5 : vector<64x1xf32> to vector<1x64x1xf32>
    %27 = vector.broadcast %26 : vector<1x64x1xf32> to vector<2x64x128xf32>
    %28 = arith.addf %25, %27 : vector<2x64x128xf32>
    %cst = arith.constant 0.000000e+00 : f32
    %29 = vector.broadcast %cst : f32 to vector<2x64x128xf32>
    %30 = arith.maximumf %28, %29 : vector<2x64x128xf32>
    %31 = tpu.transpose %30, [0, 2, 1] : vector<2x64x128xf32> -> vector<2x128x64xf32>
    %32 = vector.shape_cast %31 : vector<2x128x64xf32> to vector<256x64xf32>
    %33 = arith.truncf %32 : vector<256x64xf32> to vector<256x64xbf16>
    %c0_7 = arith.constant 0 : index
    %c0_8 = arith.constant 0 : index
    %34 = vector.load %arg5[%c0_7, %c0_8] : memref<64x128xbf16, #tpu.memory_space<vmem>>, vector<64x128xbf16>
    %cst_9 = arith.constant dense<0.000000e+00> : vector<256x128xf32>
    %35 = tpu.matmul %33, %34, %cst_9 {dimension_numbers = #tpu.dot_dimension_numbers<[1], [0], [0], [1], [0, 0, 1, 1], [], []>} : vector<256x64xbf16>, vector<64x128xbf16>, vector<256x128xf32> -> vector<256x128xf32>
    %c0_10 = arith.constant 0 : index
    %c0_11 = arith.constant 0 : index
    %36 = vector.load %arg6[%c0_10, %c0_11] : memref<1x128xf32, #tpu.memory_space<vmem>>, vector<1x128xf32>
    %37 = vector.broadcast %36 : vector<1x128xf32> to vector<256x128xf32>
    %38 = arith.addf %35, %37 : vector<256x128xf32>
    %cst_12 = arith.constant 0.000000e+00 : f32
    %39 = vector.broadcast %cst_12 : f32 to vector<256x128xf32>
    %40 = arith.maximumf %38, %39 : vector<256x128xf32>
    %41 = arith.truncf %40 : vector<256x128xf32> to vector<256x128xbf16>
    %c0_13 = arith.constant 0 : index
    %c0_14 = arith.constant 0 : index
    %42 = vector.load %arg7[%c0_13, %c0_14] : memref<128x256xbf16, #tpu.memory_space<vmem>>, vector<128x256xbf16>
    %cst_15 = arith.constant dense<0.000000e+00> : vector<256x256xf32>
    %43 = tpu.matmul %41, %42, %cst_15 {dimension_numbers = #tpu.dot_dimension_numbers<[1], [0], [0], [1], [0, 0, 1, 1], [], []>} : vector<256x128xbf16>, vector<128x256xbf16>, vector<256x256xf32> -> vector<256x256xf32>
    %c0_16 = arith.constant 0 : index
    %c0_17 = arith.constant 0 : index
    %44 = vector.load %arg8[%c0_16, %c0_17] : memref<1x256xf32, #tpu.memory_space<vmem>>, vector<1x256xf32>
    %45 = vector.broadcast %44 : vector<1x256xf32> to vector<256x256xf32>
    %46 = arith.addf %43, %45 : vector<256x256xf32>
    %cst_18 = arith.constant 0.000000e+00 : f32
    %47 = vector.broadcast %cst_18 : f32 to vector<256x256xf32>
    %48 = arith.maximumf %46, %47 : vector<256x256xf32>
    %49 = vector.shape_cast %48 : vector<256x256xf32> to vector<2x128x256xf32>
    %c0_19 = arith.constant 0 : index
    %c0_20 = arith.constant 0 : index
    %c0_21 = arith.constant 0 : index
    %50 = vector.load %arg11[%c0_19, %c0_20, %c0_21] : memref<2x128x256xf32, #tpu.memory_space<vmem>>, vector<2x128x256xf32>
    tpu.vector_store %arg11[%c0_19, %c0_20, %c0_21], %49 {strides = array<i32>} : memref<2x128x256xf32, #tpu.memory_space<vmem>>, vector<2x128x256xf32>,
    %c0_22 = arith.constant 0 : index
    %c0_23 = arith.constant 0 : index
    %51 = vector.load %arg13[%c0_22, %c0_23] : memref<2x256xf32, #tpu.memory_space<vmem>>, vector<2x256xf32>
    %cst_24 = arith.constant dense<0xFF800000> : vector<2x256xf32>
    %52 = vector.multi_reduction <maximumf>, %49, %cst_24 [1] : vector<2x128x256xf32> to vector<2x256xf32>
    %53 = arith.maximumf %51, %52 : vector<2x256xf32>
    %c0_25 = arith.constant 0 : index
    %c0_26 = arith.constant 0 : index
    %54 = vector.load %arg13[%c0_25, %c0_26] : memref<2x256xf32, #tpu.memory_space<vmem>>, vector<2x256xf32>
    tpu.vector_store %arg13[%c0_25, %c0_26], %53 {strides = array<i32>} : memref<2x256xf32, #tpu.memory_space<vmem>>, vector<2x256xf32>,
    %c0_i32_27 = arith.constant 0 : i32
    %55 = arith.cmpi eq, %arg1, %c0_i32_27 : i32
    %56 = arith.extui %55 : i1 to i32
    %c0_i32_28 = arith.constant 0 : i32
    %57 = arith.cmpi ne, %56, %c0_i32_28 : i32
    scf.if %57 {
      %c0_29 = arith.constant 0 : index
      %c0_30 = arith.constant 0 : index
      %58 = vector.load %arg13[%c0_29, %c0_30] : memref<2x256xf32, #tpu.memory_space<vmem>>, vector<2x256xf32>
      %59 = arith.truncf %58 : vector<2x256xf32> to vector<2x256xbf16>
      %c0_31 = arith.constant 0 : index
      %c0_32 = arith.constant 0 : index
      %60 = vector.load %arg9[%c0_31, %c0_32] : memref<256x256xbf16, #tpu.memory_space<vmem>>, vector<256x256xbf16>
      %cst_33 = arith.constant dense<0.000000e+00> : vector<2x256xf32>
      %61 = tpu.matmul %59, %60, %cst_33 {dimension_numbers = #tpu.dot_dimension_numbers<[1], [0], [0], [1], [0, 0, 1, 1], [], []>} : vector<2x256xbf16>, vector<256x256xbf16>, vector<2x256xf32> -> vector<2x256xf32>
      %c0_34 = arith.constant 0 : index
      %c0_35 = arith.constant 0 : index
      %62 = vector.load %arg10[%c0_34, %c0_35] : memref<1x256xf32, #tpu.memory_space<vmem>>, vector<1x256xf32>
      %63 = vector.broadcast %62 : vector<1x256xf32> to vector<2x256xf32>
      %64 = arith.addf %61, %63 : vector<2x256xf32>
      %c0_36 = arith.constant 0 : index
      %c0_37 = arith.constant 0 : index
      %65 = vector.load %arg12[%c0_36, %c0_37] : memref<2x256xf32, #tpu.memory_space<vmem>>, vector<2x256xf32>
      tpu.vector_store %arg12[%c0_36, %c0_37], %64 {strides = array<i32>} : memref<2x256xf32, #tpu.memory_space<vmem>>, vector<2x256xf32>,
    } else {
    }
    return
  }
  func.func @transform_0(%arg0: i32, %arg1: i32) -> (i32, i32, i32) {
    %c0_i32 = arith.constant 0 : i32
    %c0_i32_0 = arith.constant 0 : i32
    return %arg0, %c0_i32, %arg1 : i32, i32, i32
  }
  func.func @transform_1(%arg0: i32, %arg1: i32) -> (i32, i32) {
    %c0_i32 = arith.constant 0 : i32
    %c0_i32_0 = arith.constant 0 : i32
    %c0_i32_1 = arith.constant 0 : i32
    return %c0_i32, %c0_i32_0 : i32, i32
  }
  func.func @transform_2(%arg0: i32, %arg1: i32) -> (i32, i32) {
    %c0_i32 = arith.constant 0 : i32
    %c0_i32_0 = arith.constant 0 : i32
    %c0_i32_1 = arith.constant 0 : i32
    return %c0_i32, %c0_i32_0 : i32, i32
  }
  func.func @transform_3(%arg0: i32, %arg1: i32) -> (i32, i32) {
    %c0_i32 = arith.constant 0 : i32
    %c0_i32_0 = arith.constant 0 : i32
    %c0_i32_1 = arith.constant 0 : i32
    return %c0_i32, %c0_i32_0 : i32, i32
  }
  func.func @transform_4(%arg0: i32, %arg1: i32) -> (i32, i32) {
    %c0_i32 = arith.constant 0 : i32
    %c0_i32_0 = arith.constant 0 : i32
    %c0_i32_1 = arith.constant 0 : i32
    return %c0_i32, %c0_i32_0 : i32, i32
  }
  func.func @transform_5(%arg0: i32, %arg1: i32) -> (i32, i32) {
    %c0_i32 = arith.constant 0 : i32
    %c0_i32_0 = arith.constant 0 : i32
    %c0_i32_1 = arith.constant 0 : i32
    return %c0_i32, %c0_i32_0 : i32, i32
  }
  func.func @transform_6(%arg0: i32, %arg1: i32) -> (i32, i32) {
    %c0_i32 = arith.constant 0 : i32
    %c0_i32_0 = arith.constant 0 : i32
    %c0_i32_1 = arith.constant 0 : i32
    return %c0_i32, %c0_i32_0 : i32, i32
  }
  func.func @transform_7(%arg0: i32, %arg1: i32) -> (i32, i32) {
    %c0_i32 = arith.constant 0 : i32
    %c0_i32_0 = arith.constant 0 : i32
    %c0_i32_1 = arith.constant 0 : i32
    return %c0_i32, %c0_i32_0 : i32, i32
  }
  func.func @transform_8(%arg0: i32, %arg1: i32) -> (i32, i32) {
    %c0_i32 = arith.constant 0 : i32
    %c0_i32_0 = arith.constant 0 : i32
    %c0_i32_1 = arith.constant 0 : i32
    return %c0_i32, %c0_i32_0 : i32, i32
  }
  func.func @transform_9(%arg0: i32, %arg1: i32) -> (i32, i32, i32) {
    %c0_i32 = arith.constant 0 : i32
    %c0_i32_0 = arith.constant 0 : i32
    return %arg0, %arg1, %c0_i32 : i32, i32, i32
  }
  func.func @transform_10(%arg0: i32, %arg1: i32) -> (i32, i32) {
    %c0_i32 = arith.constant 0 : i32
    %c0_i32_0 = arith.constant 0 : i32
    return %arg0, %c0_i32 : i32, i32
  }
}

</mosaic_0001>

<bundles_post_ra>
// kernel: tpu_custom_call.1
= control target key start
LH: loop header
LB: loop body
LE: loop exit
PB: predicated region body
PF: predicated region fallthrough
CT: control target
= control target key end

     0   :  { %16 = vsyncpa [#allocation4], 0  ;;  %s2387_s0 = inlined_call_operand.vmem [shape: f32[2,3,128], index: 0, kind: input, shape index: {}]   ;;  %s2388_s1 = inlined_call_operand.vmem [shape: f32[64,3], index: 1, kind: input, shape index: {}]   ;;  %s2389_s2 = inlined_call_operand.vmem [shape: f32[64,1], index: 2, kind: input, shape index: {}]   ;;  %s2390_s3 = inlined_call_operand.hbm [shape: bf16[64,128], index: 3, kind: input, shape index: {}]   ;;  %s2391_s4 = inlined_call_operand.vmem [shape: f32[1,128], index: 4, kind: input, shape index: {}]   ;;  %s2392_s5 = inlined_call_operand.vmem [shape: bf16[128,256], index: 5, kind: input, shape index: {}]   ;;  %s2393_s6 = inlined_call_operand.vmem [shape: f32[1,256], index: 6, kind: input, shape index: {}]   ;;  %s2394_s7 = inlined_call_operand.hbm [shape: bf16[256,256], index: 7, kind: input, shape index: {}]   ;;  %s2395_s8 = inlined_call_operand.vmem [shape: f32[1,256], index: 8, kind: input, shape index: {}]   ;;  %s2396_s9 = inlined_call_operand.hbm [shape: f32[2,128,256], index: 9, kind: output, shape index: {0}]   ;;  %s2397_s10 = inlined_call_operand.hbm [shape: f32[2,256], index: 10, kind: output, shape index: {1}]  }
   0x1   :  { %17 = vsyncpa [#allocation7], 0 }
   0x2   :  { %18 = vsyncpa [#allocation5], 0 }
   0x3   :  { %19 = vsyncpa [#allocation10], 0  ;;  %s30_s15 = sshll.u32 %s2390_s3, 4  ;;  %s1913_s16 = smov [#allocation3]   ;;  %s31_s15 = int_to_ptr.hbm [resolvable:$true] %s30_s15 }
   0x4   :  { %s32_s17 = sshll.u32 %s1913_s16, 4  ;;  %s49_s20 = sshll.u32 %s2394_s7, 4  ;;  %s33_s17 = int_to_ptr.vmem [resolvable:$true] %s32_s17  ;;  %s50_s20 = int_to_ptr.hbm [resolvable:$true] %s49_s20 }
   0x5   :  { %s1914_s21 = smov 64   ;;  %s1915_s22 = smov 4  }
   0x6   :  { %38 = dma.hbm_to_vmem [thread:$0]  %s31_s15, 512, %s33_s17, [#allocation4], %s1914_s21, %s1914_s21, %s1915_s22  }
   0x7   :  { %s1916_s23 = smov [#allocation6]   ;;  %s1917_s25 = smov 128  }
   0x8   :  { %s51_s24 = sshll.u32 %s1916_s23, 4  ;;  %s1918_s26 = smov 8   ;;  %s52_s24 = int_to_ptr.vmem [resolvable:$true] %s51_s24 }
   0x9   :  { %57 = dma.hbm_to_vmem [thread:$0]  %s50_s20, 4096, %s52_s24, [#allocation7], %s1917_s25, %s1917_s25, %s1918_s26  }
   0xa   :  { %1905 = dma.done.wait [#allocation4], 512  }
   0xb   :  { %1906 = vsyncadd [#allocation4], 4294966784 }
   0xc   :  { %1907 = dma.done.wait [#allocation7], 4096  }
   0xd   :  { %1908 = vsyncadd [#allocation7], 4294963200  ;;  %v1919_v0 = vmov 2   ;;  %v1920_v1 = vmov 1   ;;  %v79_v2 = vld [vmem:[%s2388_s1 + $0x18] sm:$0xff]  ;;  %v77_v3 = vld [vmem:[%s2388_s1 + $0x8] sm:$0xff] }
   0xe   :  { %1793 = vset.pattern.permute.xlu0 %v1919_v0  ;;  %1785 = vset.pattern.permute.xlu1 %v1919_v0  ;;  %v76_v4 = vld [vmem:[%s2388_s1] sm:$0xff]  ;;  %v1921_v5 = vmov 0   ;;  %v82_v6 = vld [vmem:[%s2388_s1 + $0x30] sm:$0xff]  ;;  %v85_v9 = vld [vmem:[%s2389_s2 + $0x8] sm:$0xff]  ;;  %vm470_vm0 = vcmask 523264   ;;  %vm1155_vm1 = vcmask 1041408  }
   0xf   :  { %1787 = vset.pattern.permute.xlu2 %v1920_v1  ;;  %229 = vperm.xlu0 %1793, %v79_v2   ;;  %v78_v7 = vld [vmem:[%s2388_s1 + $0x10] sm:$0xff]  ;;  %v84_v8 = vld [vmem:[%s2389_s2] sm:$0xff]  ;;  %v81_v10 = vld [vmem:[%s2388_s1 + $0x28] sm:$0xff]  ;;  %vm1163_vm2 = vcmask 1041409   ;;  %vm1165_vm3 = vcmask 1043459   ;;  %vm1167_vm4 = vcmask 1045509  }
  0x10   :  { %155 = vperm.xlu2 %1787, %v77_v3   ;;  %217 = vperm.xlu1 %1785, %v76_v4   ;;  %v80_v11 = vld [vmem:[%s2388_s1 + $0x20] sm:$0xff]  ;;  %v89_v12 = vld [vmem:[%s2389_s2 + $0x28] sm:$0xff]  ;;  %v86_v13 = vld [vmem:[%s2389_s2 + $0x10] sm:$0xff]  ;;  %vm1169_vm5 = vcmask 1047559   ;;  %s1448_s13 = sshll.u32 %s2396_s9, 4  ;;  %s1924_s14 = smov 256   ;;  %s1449_s13 = int_to_ptr.hbm [resolvable:$true] %s1448_s13 }
  0x11   :  { %v87_v14 = vld [vmem:[%s2389_s2 + $0x18] sm:$0xff]  ;;  %v88_v15 = vld [vmem:[%s2389_s2 + $0x20] sm:$0xff]  ;;  %v90_v17 = vld [vmem:[%s2389_s2 + $0x30] sm:$0xff]  ;;  %s1926_s9 = smov [#allocation9]   ;;  %s1462_s18 = sshll.u32 %s2397_s10, 4  ;;  %s1463_s18 = int_to_ptr.hbm [resolvable:$true] %s1462_s18 }
  0x12   :  { %v83_v16 = vld [vmem:[%s2388_s1 + $0x38] sm:$0xff]  ;;  %v74_v29 = vld [vmem:[%s2387_s0] sm:$0x7]  ;;  %v75_v30 = vld [vmem:[%s2387_s0 + $0x4] sm:$0x7]  ;;  %s1925_s1 = smov 16  }
  0x13   :  { %v91_v19 = vld [vmem:[%s2389_s2 + $0x38] sm:$0xff]  ;;  %v2054_v32 = vperm.slane %v74_v29, 1  ;;  %v2056_v33 = vperm.slane %v75_v30, 1  ;;  %v2058_v34 = vperm.slane %v74_v29, 0  ;;  %v2060_v35 = vperm.slane %v75_v30, 0  ;;  %s1460_s17 = sshll.u32 %s1926_s9, 4  ;;  %s1461_s17 = int_to_ptr.vmem [resolvable:$true] %s1460_s17 }
  0x14   :  { %v2062_v36 = vperm.slane %v74_v29, 2  ;;  %v2064_v37 = vperm.slane %v75_v30, 2 }
  0x17   :  { %1794 = vset.pattern.permute.xlu0 %v1920_v1 }
  0x18   :  { %1788 = vset.pattern.permute.xlu2 %v1919_v0  ;;  %1786 = vset.pattern.permute.xlu1 %v1921_v5 }
  0x19   :  { %221 = vperm.xlu2 %1788, %v77_v3   ;;  %151 = vperm.xlu0 %1794, %v76_v4  }
  0x1a   :  { %99 = vperm.xlu1 %1786, %v77_v3  }
  0x21   :  { %1789 = vset.pattern.permute.xlu2 %v1920_v1  ;;  %175 = vperm.xlu0 %1794, %v82_v6  }
  0x22   :  { %104 = vperm.xlu1 %1786, %v78_v7   ;;  %159 = vperm.xlu2 %1789, %v78_v7  }
  0x29   :  { %1801 = vset.pattern.permute.xlu0 %v1921_v5 }
  0x2a   :  { %1790 = vset.pattern.permute.xlu1 %v1919_v0  ;;  %1791 = vset.pattern.permute.xlu2 %v1921_v5 }
  0x2b   :  { %94 = vperm.xlu0 %1801, %v76_v4   ;;  %225 = vperm.xlu1 %1790, %v78_v7  }
  0x2c   :  { %109 = vperm.xlu2 %1791, %v79_v2  }
  0x33   :  { %284 = vperm.xlu0 %1801, %v84_v8   ;;  %1792 = vset.pattern.permute.xlu1 %v1920_v1 }
  0x34   :  { %289 = vperm.xlu2 %1791, %v85_v9   ;;  %163 = vperm.xlu1 %1792, %v79_v2  }
  0x3b   :  { %119 = vperm.xlu0 %1801, %v81_v10  }
  0x3c   :  { %1796 = vset.pattern.permute.xlu2 %v1920_v1  ;;  %1795 = vset.pattern.permute.xlu1 %v1921_v5 }
  0x3d   :  { %167 = vperm.xlu2 %1796, %v80_v11   ;;  %114 = vperm.xlu1 %1795, %v80_v11  }
  0x43   :  { %309 = vperm.xlu0 %1801, %v89_v12  }
  0x45   :  { %1797 = vset.pattern.permute.xlu2 %v1919_v0  ;;  %294 = vperm.xlu1 %1795, %v86_v13  }
  0x46   :  { %233 = vperm.xlu2 %1797, %v80_v11  }
  0x4d   :  { %1798 = vset.pattern.permute.xlu1 %v1920_v1 }
  0x4e   :  { %1799 = vset.pattern.permute.xlu2 %v1921_v5  ;;  %171 = vperm.xlu1 %1798, %v81_v10  }
  0x4f   :  { %299 = vperm.xlu2 %1799, %v87_v14  }
  0x56   :  { %1800 = vset.pattern.permute.xlu1 %v1919_v0 }
  0x57   :  { %124 = vperm.xlu2 %1799, %v82_v6   ;;  %237 = vperm.xlu1 %1800, %v81_v10  }
  0x5f   :  { %1803 = vset.pattern.permute.xlu2 %v1919_v0  ;;  %1802 = vset.pattern.permute.xlu1 %v1921_v5 }
  0x60   :  { %241 = vperm.xlu2 %1803, %v82_v6   ;;  %304 = vperm.xlu1 %1802, %v88_v15  }
  0x68   :  { %1804 = vset.pattern.permute.xlu2 %v1920_v1  ;;  %129 = vperm.xlu1 %1802, %v83_v16  }
  0x69   :  { %179 = vperm.xlu2 %1804, %v83_v16  }
  0x6a   :  { %v156_v18 = vpop.permute.xlu2 %155 }
  0x6b   :  { %v185_v48 = vmul.f32 %v2054_v32, %v156_v18  ;;  %v193_v49 = vmul.f32 %v2056_v33, %v156_v18 }
  0x70   :  { %1805 = vset.pattern.permute.xlu1 %v1919_v0 }
  0x71   :  { %1806 = vset.pattern.permute.xlu2 %v1921_v5  ;;  %245 = vperm.xlu1 %1805, %v83_v16  }
  0x72   :  { %314 = vperm.xlu2 %1806, %v90_v17  }
  0x73   :  { %v222_v20 = vpop.permute.xlu2 %221 }
  0x74   :  { %v251_v58 = vmul.f32 %v2062_v36, %v222_v20  ;;  %v259_v59 = vmul.f32 %v2064_v37, %v222_v20 }
  0x79   :  { %1807 = vset.pattern.permute.xlu1 %v1921_v5 }
  0x7a   :  { %319 = vperm.xlu1 %1807, %v91_v19  }
  0x7c   :  { %v160_v23 = vpop.permute.xlu2 %159 }
  0x7d   :  { %v186_v9 = vmul.f32 %v2054_v32, %v160_v23  ;;  %v194_v10 = vmul.f32 %v2056_v33, %v160_v23 }
  0x81   :  { %v2044_v21 = vpop.permute.xlu0 %229 }
  0x82   :  { %v218_v22 = vpop.permute.xlu1 %217  ;;  %v253_v29 = vmul.f32 %v2062_v36, %v2044_v21  ;;  %v261_v30 = vmul.f32 %v2064_v37, %v2044_v21 }
  0x83   :  { %v250_v50 = vmul.f32 %v2062_v36, %v218_v22  ;;  %v258_v51 = vmul.f32 %v2064_v37, %v218_v22 }
  0x86   :  { %v110_v26 = vpop.permute.xlu2 %109 }
  0x87   :  { %v137_v17 = vmul.f32 %v2058_v34, %v110_v26  ;;  %v145_v18 = vmul.f32 %v2060_v35, %v110_v26 }
  0x8b   :  { %v152_v25 = vpop.permute.xlu0 %151 }
  0x8c   :  { %v100_v24 = vpop.permute.xlu1 %99  ;;  %v184_v39 = vmul.f32 %v2054_v32, %v152_v25  ;;  %v192_v40 = vmul.f32 %v2056_v33, %v152_v25 }
  0x8d   :  { %v135_v44 = vmul.f32 %v2058_v34, %v100_v24  ;;  %v143_v45 = vmul.f32 %v2060_v35, %v100_v24 }
  0x8e   :  { %v290_v31 = vpop.permute.xlu2 %289 }
  0x8f   :  { %v201_v52 = vadd.f32 %v185_v48, %v135_v44  ;;  %v209_v53 = vadd.f32 %v193_v49, %v143_v45 }
  0x91   :  { %v267_v63 = vadd.f32 %v251_v58, %v201_v52  ;;  %v275_v0 = vadd.f32 %v259_v59, %v209_v53 }
  0x93   :  { %v2046_v28 = vpop.permute.xlu0 %175  ;;  %v323_v3 = vadd.f32 %v290_v31, %v267_v63  ;;  %v331_v4 = vadd.f32 %v290_v31, %v275_v0 }
  0x94   :  { %v105_v27 = vpop.permute.xlu1 %104 }
  0x95   :  { %v339_v6 = vmax.f32 %v323_v3, 0.0  ;;  %v347_v7 = vmax.f32 %v331_v4, 0.0  ;;  %v136_v11 = vmul.f32 %v2058_v34, %v105_v27  ;;  %v144_v12 = vmul.f32 %v2060_v35, %v105_v27  ;;  %v1705_v3 = vld [vmem:[#allocation3 + $0x18] sm:$0xff] }
  0x96   :  { %523 = vmatpush.bf16.msra.mxu0 %v1705_v3 }
  0x97   :  { %v168_v56 = vpop.permute.xlu2 %167  ;;  %v202_v19 = vadd.f32 %v186_v9, %v136_v11  ;;  %v210_v20 = vadd.f32 %v194_v10, %v144_v12  ;;  %v1704_v10 = vld [vmem:[#allocation3 + $0x10] sm:$0xff] }
  0x98   :  { %v188_v49 = vmul.f32 %v2054_v32, %v168_v56  ;;  %v196_v21 = vmul.f32 %v2056_v33, %v168_v56 }
  0x9a   :  { %524 = vmatpush.bf16.msra.mxu0 %v1704_v10  ;;  %v1570_v10 = vld [vmem:[%s2392_s5 + $0x78] sm:$0xf0] }
  0x9d   :  { %v95_v38 = vpop.permute.xlu0 %94  ;;  %v226_v43 = vpop.permute.xlu1 %225 }
  0x9e   :  { %v134_v41 = vmul.f32 %v2058_v34, %v95_v38  ;;  %v142_v42 = vmul.f32 %v2060_v35, %v95_v38  ;;  %v252_v13 = vmul.f32 %v2062_v36, %v226_v43  ;;  %v260_v14 = vmul.f32 %v2064_v37, %v226_v43 }
  0xa0   :  { %v200_v46 = vadd.f32 %v184_v39, %v134_v41  ;;  %v208_v47 = vadd.f32 %v192_v40, %v142_v42  ;;  %v234_v5 = vpop.permute.xlu2 %233  ;;  %v268_v24 = vadd.f32 %v252_v13, %v202_v19  ;;  %v276_v25 = vadd.f32 %v260_v14, %v210_v20 }
  0xa2   :  { %v266_v54 = vadd.f32 %v250_v50, %v200_v46  ;;  %v274_v55 = vadd.f32 %v258_v51, %v208_v47 }
  0xa5   :  { %v285_v57 = vpop.permute.xlu0 %284 }
  0xa6   :  { %v322_v60 = vadd.f32 %v285_v57, %v266_v54  ;;  %v330_v61 = vadd.f32 %v285_v57, %v274_v55  ;;  %v164_v62 = vpop.permute.xlu1 %163  ;;  %v254_v54 = vmul.f32 %v2062_v36, %v234_v5  ;;  %v262_v55 = vmul.f32 %v2064_v37, %v234_v5 }
  0xa7   :  { %v187_v15 = vmul.f32 %v2054_v32, %v164_v62  ;;  %v195_v16 = vmul.f32 %v2056_v33, %v164_v62 }
  0xa8   :  { %v338_v1 = vmax.f32 %v322_v60, 0.0  ;;  %v346_v2 = vmax.f32 %v330_v61, 0.0 }
  0xa9   :  { %v203_v22 = vadd.f32 %v187_v15, %v137_v17  ;;  %v211_v23 = vadd.f32 %v195_v16, %v145_v18  ;;  %v300_v31 = vpop.permute.xlu2 %299 }
  0xaa   :  { %386 = vxpose.xlu0.b32.start [1/8] (short) %v346_v2, 128  ;;  %354 = vxpose.xlu2.b32.start [1/8] (short) %v338_v1, 128 }
  0xab   :  { %v269_v40 = vadd.f32 %v253_v29, %v203_v22  ;;  %v277_v41 = vadd.f32 %v261_v30, %v211_v23  ;;  %v190_v22 = vmul.f32 %v2054_v32, %v2046_v28  ;;  %v198_v23 = vmul.f32 %v2056_v33, %v2046_v28 }
  0xad   :  { %v325_v43 = vadd.f32 %v300_v31, %v269_v40  ;;  %v333_v44 = vadd.f32 %v300_v31, %v277_v41  ;;  %v120_v57 = vpop.permute.xlu0 %119 }
  0xae   :  { %v139_v62 = vmul.f32 %v2058_v34, %v120_v57  ;;  %v147_v56 = vmul.f32 %v2060_v35, %v120_v57 }
  0xaf   :  { %v115_v8 = vpop.permute.xlu1 %114  ;;  %v341_v46 = vmax.f32 %v325_v43, 0.0  ;;  %v349_v47 = vmax.f32 %v333_v44, 0.0 }
  0xb0   :  { %v138_v50 = vmul.f32 %v2058_v34, %v115_v8  ;;  %v146_v51 = vmul.f32 %v2060_v35, %v115_v8 }
  0xb1   :  { %v125_v48 = vpop.permute.xlu2 %124 }
  0xb2   :  { %387 = vxpose.xlu0.b32.cont [2/8] (short) %v347_v7, 128  ;;  %355 = vxpose.xlu2.b32.cont [2/8] (short) %v339_v6, 128  ;;  %v204_v58 = vadd.f32 %v188_v49, %v138_v50  ;;  %v212_v59 = vadd.f32 %v196_v21, %v146_v51  ;;  %v140_v16 = vmul.f32 %v2058_v34, %v125_v48 }
  0xb3   :  { %v148_v17 = vmul.f32 %v2060_v35, %v125_v48 }
  0xb4   :  { %v270_v1 = vadd.f32 %v254_v54, %v204_v58  ;;  %v278_v2 = vadd.f32 %v262_v55, %v212_v59 }
  0xb5   :  { %v310_v15 = vpop.permute.xlu0 %309  ;;  %v214_v29 = vadd.f32 %v198_v23, %v148_v17  ;;  %v1716_v23 = vld [vmem:[%s2392_s5 + $0x54] sm:$0xf] }
  0xb7   :  { %v295_v27 = vpop.permute.xlu1 %294 }
  0xb8   :  { %v324_v38 = vadd.f32 %v295_v27, %v268_v24  ;;  %v332_v39 = vadd.f32 %v295_v27, %v276_v25  ;;  %v206_v27 = vadd.f32 %v190_v22, %v140_v16  ;;  %v1718_v16 = vld [vmem:[%s2392_s5 + $0x64] sm:$0xf]  ;;  %v1717_v22 = vld [vmem:[%s2392_s5 + $0x54] sm:$0xf0] }
  0xba   :  { %v340_v42 = vmax.f32 %v324_v38, 0.0  ;;  %v348_v26 = vmax.f32 %v332_v39, 0.0  ;;  %v242_v53 = vpop.permute.xlu2 %241 }
  0xbb   :  { %v256_v24 = vmul.f32 %v2062_v36, %v242_v53  ;;  %v264_v25 = vmul.f32 %v2064_v37, %v242_v53 }
  0xbc   :  { %388 = vxpose.xlu0.b32.cont [3/8] (short) %v348_v26, 128  ;;  %356 = vxpose.xlu2.b32.cont [3/8] (short) %v340_v42, 128 }
  0xbd   :  { %v272_v39 = vadd.f32 %v256_v24, %v206_v27  ;;  %v280_v40 = vadd.f32 %v264_v25, %v214_v29  ;;  %v1554_v25 = vld [vmem:[%s2392_s5 + $0x58] sm:$0xf0]  ;;  %v1544_v29 = vld [vmem:[%s2392_s5 + $0x40] sm:$0xf] }
  0xbe   :  { %v1557_v27 = vor.u32 %v1716_v23, %v1554_v25 }
  0xc0   :  { %v172_v45 = vpop.permute.xlu1 %171 }
  0xc1   :  { %v189_v60 = vmul.f32 %v2054_v32, %v172_v45  ;;  %v197_v61 = vmul.f32 %v2056_v33, %v172_v45 }
  0xc3   :  { %v205_v5 = vadd.f32 %v189_v60, %v139_v62  ;;  %v213_v6 = vadd.f32 %v197_v61, %v147_v56  ;;  %v180_v9 = vpop.permute.xlu2 %179 }
  0xc4   :  { %389 = vxpose.xlu0.b32.cont [4/8] (short) %v349_v47, 128  ;;  %357 = vxpose.xlu2.b32.cont [4/8] (short) %v341_v46, 128  ;;  %v191_v43 = vmul.f32 %v2054_v32, %v180_v9  ;;  %v199_v28 = vmul.f32 %v2056_v33, %v180_v9 }
  0xc9   :  { %v238_v52 = vpop.permute.xlu1 %237 }
  0xca   :  { %v255_v63 = vmul.f32 %v2062_v36, %v238_v52  ;;  %v263_v0 = vmul.f32 %v2064_v37, %v238_v52 }
  0xcc   :  { %v271_v11 = vadd.f32 %v255_v63, %v205_v5  ;;  %v279_v12 = vadd.f32 %v263_v0, %v213_v6  ;;  %v315_v38 = vpop.permute.xlu2 %314  ;;  %v1568_v6 = vld [vmem:[%s2392_s5 + $0x70] sm:$0xf] }
  0xcd   :  { %v328_v41 = vadd.f32 %v315_v38, %v272_v39  ;;  %v336_v42 = vadd.f32 %v315_v38, %v280_v40  ;;  %v1546_v38 = vld [vmem:[%s2392_s5 + $0x48] sm:$0xf0] }
  0xce   :  { %v327_v18 = vadd.f32 %v310_v15, %v271_v11  ;;  %v335_v19 = vadd.f32 %v310_v15, %v279_v12  ;;  %v1719_v15 = vld [vmem:[%s2392_s5 + $0x64] sm:$0xf0] }
  0xcf   :  { %v344_v44 = vmax.f32 %v328_v41, 0.0  ;;  %v352_v45 = vmax.f32 %v336_v42, 0.0 }
  0xd0   :  { %v343_v30 = vmax.f32 %v327_v18, 0.0  ;;  %v351_v31 = vmax.f32 %v335_v19, 0.0  ;;  %v1562_v18 = vld [vmem:[%s2392_s5 + $0x68] sm:$0xf0] }
  0xd1   :  { %v2151_v19 = vor.u32 %v1718_v16, %v1562_v18 }
  0xd2   :  { %v305_v4 = vpop.permute.xlu1 %304 }
  0xd3   :  { %v326_v7 = vadd.f32 %v305_v4, %v270_v1  ;;  %v334_v8 = vadd.f32 %v305_v4, %v278_v2 }
  0xd5   :  { %v342_v13 = vmax.f32 %v326_v7, 0.0  ;;  %v350_v14 = vmax.f32 %v334_v8, 0.0  ;;  %v1721_v7 = vld [vmem:[%s2392_s5 + $0x74] sm:$0xf0]  ;;  %v1720_v8 = vld [vmem:[%s2392_s5 + $0x74] sm:$0xf] }
  0xd6   :  { %v1569_v9 = vor.u32 %v1721_v7, %v1568_v6  ;;  %v2135_v11 = vor.u32 %v1720_v8, %v1570_v10 }
  0xd7   :  { %390 = vxpose.xlu0.b32.cont [5/8] (short) %v350_v14, 128  ;;  %358 = vxpose.xlu2.b32.cont [5/8] (short) %v342_v13, 128  ;;  %v1560_v14 = vld [vmem:[%s2392_s5 + $0x60] sm:$0xf] }
  0xd8   :  { %758 = vmatpush.bf16.msra.mxu1 %v1569_v9  ;;  %1754 = vmatpush.bf16.msra.mxu3 %v1569_v9  ;;  %v1561_v17 = vor.u32 %v1719_v15, %v1560_v14 }
  0xd9   :  { %847 = vmatpush.bf16.msra.mxu2 %v2135_v11 }
  0xda   :  { %v130_v20 = vpop.permute.xlu1 %129 }
  0xdb   :  { %v141_v46 = vmul.f32 %v2058_v34, %v130_v20  ;;  %v149_v47 = vmul.f32 %v2060_v35, %v130_v20  ;;  %v1703_v34 = vld [vmem:[#allocation3 + $0x8] sm:$0xff]  ;;  %v1702_v35 = vld [vmem:[#allocation3] sm:$0xff] }
  0xdc   :  { %525 = vmatpush.bf16.msra.mxu0 %v1703_v34  ;;  %v1552_v20 = vld [vmem:[%s2392_s5 + $0x50] sm:$0xf]  ;;  %759 = vmatpush.bf16.msra.mxu1 %v1561_v17 }
  0xdd   :  { %v207_v21 = vadd.f32 %v191_v43, %v141_v46  ;;  %v215_v50 = vadd.f32 %v199_v28, %v149_v47  ;;  %v1553_v24 = vor.u32 %v1717_v22, %v1552_v20  ;;  %1755 = vmatpush.bf16.msra.mxu3 %v1561_v17  ;;  %848 = vmatpush.bf16.msra.mxu2 %v2151_v19  ;;  %v1713_v43 = vld [vmem:[%s2392_s5 + $0x34] sm:$0xf0]  ;;  %v1712_v28 = vld [vmem:[%s2392_s5 + $0x34] sm:$0xf] }
  0xdf   :  { %391 = vxpose.xlu0.b32.cont [6/8] (short) %v351_v31, 128  ;;  %359 = vxpose.xlu2.b32.cont [6/8] (short) %v343_v30, 128  ;;  %v1715_v30 = vld [vmem:[%s2392_s5 + $0x44] sm:$0xf0]  ;;  %v1714_v31 = vld [vmem:[%s2392_s5 + $0x44] sm:$0xf] }
  0xe0   :  { %526 = vmatpush.bf16.msra.mxu0 %v1702_v35  ;;  %760 = vmatpush.bf16.msra.mxu1 %v1553_v24  ;;  %v1545_v41 = vor.u32 %v1715_v30, %v1544_v29  ;;  %v1549_v42 = vor.u32 %v1714_v31, %v1546_v38  ;;  %v1522_v35 = vld [vmem:[%s2392_s5 + $0x18] sm:$0xf0] }
  0xe1   :  { %1756 = vmatpush.bf16.msra.mxu3 %v1553_v24  ;;  %849 = vmatpush.bf16.msra.mxu2 %v1557_v27 }
  0xe3   :  { %v246_v26 = vpop.permute.xlu1 %245 }
  0xe4   :  { %v257_v48 = vmul.f32 %v2062_v36, %v246_v26  ;;  %v265_v49 = vmul.f32 %v2064_v37, %v246_v26  ;;  %v1536_v26 = vld [vmem:[%s2392_s5 + $0x30] sm:$0xf]  ;;  %761 = vmatpush.bf16.msra.mxu1 %v1545_v41 }
  0xe5   :  { %1757 = vmatpush.bf16.msra.mxu3 %v1545_v41  ;;  %850 = vmatpush.bf16.msra.mxu2 %v1549_v42 }
  0xe6   :  { %v273_v51 = vadd.f32 %v257_v48, %v207_v21  ;;  %v281_v52 = vadd.f32 %v265_v49, %v215_v50  ;;  %v1528_v49 = vld [vmem:[%s2392_s5 + $0x20] sm:$0xf]  ;;  %v1711_v21 = vld [vmem:[%s2392_s5 + $0x24] sm:$0xf0]  ;;  %v1710_v50 = vld [vmem:[%s2392_s5 + $0x24] sm:$0xf] }
  0xe7   :  { %392 = vxpose.xlu0.b32.cont [7/8] (short) %v352_v45, 128  ;;  %360 = vxpose.xlu2.b32.cont [7/8] (short) %v344_v44, 128  ;;  %v1538_v44 = vld [vmem:[%s2392_s5 + $0x38] sm:$0xf0]  ;;  %v1537_v45 = vor.u32 %v1713_v43, %v1536_v26 }
  0xe8   :  { %v1541_v46 = vor.u32 %v1712_v28, %v1538_v44 }
  0xe9   :  { %762 = vmatpush.bf16.msra.mxu1 %v1537_v45  ;;  %1758 = vmatpush.bf16.msra.mxu3 %v1537_v45 }
  0xea   :  { %851 = vmatpush.bf16.msra.mxu2 %v1541_v46 }
  0xec   :  { %v320_v53 = vpop.permute.xlu1 %319 }
  0xed   :  { %v329_v32 = vadd.f32 %v320_v53, %v273_v51  ;;  %v337_v54 = vadd.f32 %v320_v53, %v281_v52  ;;  %v1529_v52 = vor.u32 %v1711_v21, %v1528_v49  ;;  %v1530_v53 = vld [vmem:[%s2392_s5 + $0x28] sm:$0xf0] }
  0xef   :  { %v345_v33 = vmax.f32 %v329_v32, 0.0  ;;  %v353_v55 = vmax.f32 %v337_v54, 0.0  ;;  %v1533_v32 = vor.u32 %v1710_v50, %v1530_v53  ;;  %v1520_v54 = vld [vmem:[%s2392_s5 + $0x10] sm:$0xf]  ;;  %763 = vmatpush.bf16.msra.mxu1 %v1529_v52  ;;  %1759 = vmatpush.bf16.msra.mxu3 %v1529_v52 }
  0xf1   :  { %393 = vxpose.xlu0.b32.end [8/8] (short) %v353_v55, 128  ;;  %361 = vxpose.xlu2.b32.end [8/8] (short) %v345_v33, 128  ;;  %v1709_v33 = vld [vmem:[%s2392_s5 + $0x14] sm:$0xf0]  ;;  %v1708_v55 = vld [vmem:[%s2392_s5 + $0x14] sm:$0xf] }
  0xf2   :  { %v1521_v34 = vor.u32 %v1709_v33, %v1520_v54  ;;  %852 = vmatpush.bf16.msra.mxu2 %v1533_v32 }
  0xf4   :  { %764 = vmatpush.bf16.msra.mxu1 %v1521_v34  ;;  %1760 = vmatpush.bf16.msra.mxu3 %v1521_v34 }
 0x152   :  { %v370_v36 = vpop.trf.xlu2 }
 0x15a   :  { %v371_v57 = vpop.trf.xlu2 }
 0x15b   :  { %v418_v37 = vpack.c.bf16 %v371_v57, %v370_v36  ;;  %v1525_v36 = vor.u32 %v1708_v55, %v1522_v35 }
 0x15d   :  { %1494 = vmatmul.msk.bf16.vlgmr.msra.gmra.mxu0 %vm470_vm0, %v418_v37  ;;  %v2178_v40 = vpop.trf.xlu0  ;;  %853 = vmatpush.bf16.msra.mxu2 %v1525_v36  ;;  %v1512_v37 = vld [vmem:[%s2392_s5] sm:$0xf] }
 0x162   :  { %v372_v58 = vpop.trf.xlu2 }
 0x165   :  { %v403_v51 = vpop.trf.xlu0 }
 0x16a   :  { %v373_v59 = vpop.trf.xlu2 }
 0x16b   :  { %v419_v60 = vpack.c.bf16 %v373_v59, %v372_v58  ;;  %v1707_v58 = vld [vmem:[%s2392_s5 + $0x4] sm:$0xf0]  ;;  %v1706_v59 = vld [vmem:[%s2392_s5 + $0x4] sm:$0xf] }
 0x16d   :  { %1495 = vmatmul.msk.bf16.gmra.mxu0 %vm470_vm0, %v419_v60  ;;  %v1513_v60 = vor.u32 %v1707_v58, %v1512_v37 }
 0x16f   :  { %765 = vmatpush.bf16.msra.mxu1 %v1513_v60  ;;  %1761 = vmatpush.bf16.msra.mxu3 %v1513_v60 }
 0x172   :  { %v374_v61 = vpop.trf.xlu2 }
 0x173   :  { %1762 = vmatpush.bf16.msrb.mxu3 %v2135_v11 }
 0x177   :  { %1763 = vmatpush.bf16.msrb.mxu3 %v2151_v19 }
 0x17a   :  { %v375_v62 = vpop.trf.xlu2 }
 0x17b   :  { %v420_v56 = vpack.c.bf16 %v375_v62, %v374_v61  ;;  %v1514_v61 = vld [vmem:[%s2392_s5 + $0x8] sm:$0xf0]  ;;  %1764 = vmatpush.bf16.msrb.mxu3 %v1557_v27 }
 0x17c   :  { %v1517_v62 = vor.u32 %v1706_v59, %v1514_v61 }
 0x17d   :  { %1496 = vmatmul.msk.bf16.gmra.mxu0 %vm470_vm0, %v420_v56  ;;  %v404_v56 = vpop.trf.xlu0 }
 0x17e   :  { %854 = vmatpush.bf16.msra.mxu2 %v1517_v62 }
 0x17f   :  { %1765 = vmatpush.bf16.msrb.mxu3 %v1549_v42 }
 0x182   :  { %v376_v63 = vpop.trf.xlu2 }
 0x183   :  { %1766 = vmatpush.bf16.msrb.mxu3 %v1541_v46 }
 0x187   :  { %1767 = vmatpush.bf16.msrb.mxu3 %v1533_v32 }
 0x18a   :  { %v377_v0 = vpop.trf.xlu2 }
 0x18b   :  { %v421_v1 = vpack.c.bf16 %v377_v0, %v376_v63  ;;  %1768 = vmatpush.bf16.msrb.mxu3 %v1525_v36 }
 0x18d   :  { %1497 = vmatmul.msk.bf16.gmra.mxu0 %vm470_vm0, %v421_v1  ;;  %v405_v1 = vpop.trf.xlu0 }
 0x18e   :  { %v427_v14 = vpack.c.bf16 %v405_v1, %v404_v56 }
 0x18f   :  { %1769 = vmatpush.bf16.msrb.mxu3 %v1517_v62 }
 0x192   :  { %v378_v2 = vpop.trf.xlu2 }
 0x19a   :  { %v379_v3 = vpop.trf.xlu2 }
 0x19b   :  { %v422_v4 = vpack.c.bf16 %v379_v3, %v378_v2  ;;  %v406_v3 = vpop.trf.xlu0 }
 0x19d   :  { %1498 = vmatmul.msk.bf16.gmra.mxu0 %vm470_vm0, %v422_v4  ;;  %v426_v4 = vpack.c.bf16 %v403_v51, %v2178_v40 }
 0x1a2   :  { %v380_v5 = vpop.trf.xlu2 }
 0x1a3   :  { %v407_v9 = vpop.trf.xlu0 }
 0x1a4   :  { %v428_v25 = vpack.c.bf16 %v407_v9, %v406_v3 }
 0x1aa   :  { %v381_v12 = vpop.trf.xlu2 }
 0x1ab   :  { %v423_v13 = vpack.c.bf16 %v381_v12, %v380_v5  ;;  %v2236_v5 = vld [vmem:[%s2391_s4] ss:$0 sm:$0xff]  ;;  %v408_v15 = vpop.trf.xlu0 }
 0x1ad   :  { %1499 = vmatmul.msk.bf16.gmra.mxu0 %vm470_vm0, %v423_v13 }
 0x1b2   :  { %v382_v39 = vpop.trf.xlu2 }
 0x1b3   :  { %v409_v23 = vpop.trf.xlu0 }
 0x1b4   :  { %v429_v42 = vpack.c.bf16 %v409_v23, %v408_v15 }
 0x1ba   :  { %v383_v47 = vpop.trf.xlu2 }
 0x1bb   :  { %v424_v48 = vpack.c.bf16 %v383_v47, %v382_v39  ;;  %v410_v30 = vpop.trf.xlu0 }
 0x1bd   :  { %1500 = vmatmul.msk.bf16.gmra.mxu0 %vm470_vm0, %v424_v48 }
 0x1c2   :  { %v384_v57 = vpop.trf.xlu2 }
 0x1c3   :  { %v411_v26 = vpop.trf.xlu0 }
 0x1c4   :  { %v430_v21 = vpack.c.bf16 %v411_v26, %v410_v30 }
 0x1ca   :  { %v385_v63 = vpop.trf.xlu2 }
 0x1cb   :  { %v425_v0 = vpack.c.bf16 %v385_v63, %v384_v57  ;;  %v412_v47 = vpop.trf.xlu0 }
 0x1cd   :  { %1501 = vmatmul.msk.bf16.gmra.mxu0 %vm470_vm0, %v425_v0 }
 0x1d3   :  { %v413_v50 = vpop.trf.xlu0 }
 0x1d4   :  { %v431_v35 = vpack.c.bf16 %v413_v50, %v412_v47 }
 0x1da   :  { %v528_v2 = vpop.f32.mrf.mxu0 }
 0x1db   :  { %v529_v6 = vadd.f32 %v2236_v5, %v528_v2  ;;  %v414_v55 = vpop.trf.xlu0 }
 0x1dd   :  { %1502 = vmatmul.msk.bf16.gmra.mxu0 %vm470_vm0, %v426_v4  ;;  %v608_v10 = vmax.f32 %v529_v6, 0.0 }
 0x1e2   :  { %v530_v7 = vpop.f32.mrf.mxu0 }
 0x1e3   :  { %v531_v8 = vadd.f32 %v2236_v5, %v530_v7  ;;  %v415_v58 = vpop.trf.xlu0 }
 0x1e4   :  { %v432_v56 = vpack.c.bf16 %v415_v58, %v414_v55 }
 0x1e5   :  { %v609_v11 = vmax.f32 %v531_v8, 0.0 }
 0x1e7   :  { %v640_v12 = vpack.c.bf16 %v609_v11, %v608_v10 }
 0x1e9   :  { %766 = vmatmul.bf16.vlgmr.msra.gmra.mxu1 %v640_v12  ;;  %855 = vmatmul.bf16.vlgmr.msra.gmra.mxu2 %v640_v12 }
 0x1ea   :  { %v533_v13 = vpop.f32.mrf.mxu0 }
 0x1eb   :  { %v534_v16 = vadd.f32 %v2236_v5, %v533_v13  ;;  %v416_v63 = vpop.trf.xlu0 }
 0x1ed   :  { %1503 = vmatmul.msk.bf16.gmra.mxu0 %vm470_vm0, %v427_v14  ;;  %v610_v19 = vmax.f32 %v534_v16, 0.0 }
 0x1f2   :  { %v535_v17 = vpop.f32.mrf.mxu0 }
 0x1f3   :  { %v536_v18 = vadd.f32 %v2236_v5, %v535_v17  ;;  %v417_v7 = vpop.trf.xlu0  ;;  %v672_v17 = vld [vmem:[%s2393_s6] sm:$0x3]  ;;  %s1923_s6 = smov [#allocation8]  }
 0x1f4   :  { %v433_v9 = vpack.c.bf16 %v417_v7, %v416_v63  ;;  %s1446_s30 = sshll.u32 %s1923_s6, 4  ;;  %s1447_s30 = int_to_ptr.vmem [resolvable:$true] %s1446_s30 }
 0x1f5   :  { %v611_v20 = vmax.f32 %v536_v18, 0.0 }
 0x1f7   :  { %v641_v22 = vpack.c.bf16 %v611_v20, %v610_v19 }
 0x1f9   :  { %771 = vmatmul.bf16.gmra.mxu1 %v641_v22  ;;  %860 = vmatmul.bf16.gmra.mxu2 %v641_v22  ;;  %v2267_v22 = vperm.slane %v672_v17, 0 }
 0x1fa   :  { %v538_v24 = vpop.f32.mrf.mxu0 }
 0x1fb   :  { %v539_v27 = vadd.f32 %v2236_v5, %v538_v24 }
 0x1fd   :  { %1504 = vmatmul.msk.bf16.gmra.mxu0 %vm470_vm0, %v428_v25  ;;  %v612_v38 = vmax.f32 %v539_v27, 0.0 }
 0x202   :  { %v540_v29 = vpop.f32.mrf.mxu0 }
 0x203   :  { %v541_v31 = vadd.f32 %v2236_v5, %v540_v29 }
 0x205   :  { %v613_v39 = vmax.f32 %v541_v31, 0.0  ;;  %v2270_v31 = vperm.slane %v672_v17, 1 }
 0x207   :  { %v642_v40 = vpack.c.bf16 %v613_v39, %v612_v38 }
 0x209   :  { %776 = vmatmul.bf16.gmra.mxu1 %v642_v40  ;;  %865 = vmatmul.bf16.gmra.mxu2 %v642_v40 }
 0x20a   :  { %v543_v41 = vpop.f32.mrf.mxu0 }
 0x20b   :  { %v544_v43 = vadd.f32 %v2236_v5, %v543_v41 }
 0x20d   :  { %1505 = vmatmul.msk.bf16.gmra.mxu0 %vm470_vm0, %v429_v42  ;;  %v614_v45 = vmax.f32 %v544_v43, 0.0 }
 0x212   :  { %v545_v28 = vpop.f32.mrf.mxu0 }
 0x213   :  { %v546_v44 = vadd.f32 %v2236_v5, %v545_v28 }
 0x215   :  { %v615_v46 = vmax.f32 %v546_v44, 0.0 }
 0x217   :  { %v643_v48 = vpack.c.bf16 %v615_v46, %v614_v45 }
 0x219   :  { %781 = vmatmul.bf16.gmra.mxu1 %v643_v48  ;;  %870 = vmatmul.bf16.gmra.mxu2 %v643_v48 }
 0x21a   :  { %v548_v49 = vpop.f32.mrf.mxu0 }
 0x21b   :  { %v549_v51 = vadd.f32 %v2236_v5, %v548_v49 }
 0x21d   :  { %1506 = vmatmul.msk.bf16.gmra.mxu0 %vm470_vm0, %v430_v21  ;;  %v616_v32 = vmax.f32 %v549_v51, 0.0 }
 0x222   :  { %v550_v52 = vpop.f32.mrf.mxu0 }
 0x223   :  { %v551_v53 = vadd.f32 %v2236_v5, %v550_v52 }
 0x225   :  { %v617_v54 = vmax.f32 %v551_v53, 0.0 }
 0x227   :  { %v644_v33 = vpack.c.bf16 %v617_v54, %v616_v32 }
 0x229   :  { %786 = vmatmul.bf16.gmra.mxu1 %v644_v33  ;;  %875 = vmatmul.bf16.gmra.mxu2 %v644_v33 }
 0x22a   :  { %v553_v34 = vpop.f32.mrf.mxu0 }
 0x22b   :  { %v554_v36 = vadd.f32 %v2236_v5, %v553_v34 }
 0x22d   :  { %1507 = vmatmul.msk.bf16.gmra.mxu0 %vm470_vm0, %v431_v35  ;;  %v618_v59 = vmax.f32 %v554_v36, 0.0 }
 0x232   :  { %v555_v57 = vpop.f32.mrf.mxu0 }
 0x233   :  { %v556_v37 = vadd.f32 %v2236_v5, %v555_v57 }
 0x235   :  { %v619_v60 = vmax.f32 %v556_v37, 0.0 }
 0x237   :  { %v645_v61 = vpack.c.bf16 %v619_v60, %v618_v59 }
 0x239   :  { %791 = vmatmul.bf16.gmra.mxu1 %v645_v61  ;;  %880 = vmatmul.bf16.gmra.mxu2 %v645_v61 }
 0x23a   :  { %v558_v62 = vpop.f32.mrf.mxu0 }
 0x23b   :  { %v559_v0 = vadd.f32 %v2236_v5, %v558_v62 }
 0x23d   :  { %1508 = vmatmul.msk.bf16.gmra.mxu0 %vm470_vm0, %v432_v56  ;;  %v620_v3 = vmax.f32 %v559_v0, 0.0 }
 0x242   :  { %v560_v1 = vpop.f32.mrf.mxu0 }
 0x243   :  { %v561_v2 = vadd.f32 %v2236_v5, %v560_v1 }
 0x245   :  { %v621_v4 = vmax.f32 %v561_v2, 0.0 }
 0x247   :  { %v646_v6 = vpack.c.bf16 %v621_v4, %v620_v3 }
 0x249   :  { %796 = vmatmul.bf16.gmra.mxu1 %v646_v6  ;;  %885 = vmatmul.bf16.gmra.mxu2 %v646_v6 }
 0x24a   :  { %v563_v8 = vpop.f32.mrf.mxu0 }
 0x24b   :  { %v564_v10 = vadd.f32 %v2236_v5, %v563_v8 }
 0x24d   :  { %1509 = vmatmul.msk.bf16.gmra.mxu0 %vm470_vm0, %v433_v9  ;;  %v622_v13 = vmax.f32 %v564_v10, 0.0 }
 0x252   :  { %v565_v11 = vpop.f32.mrf.mxu0 }
 0x253   :  { %v566_v12 = vadd.f32 %v2236_v5, %v565_v11 }
 0x255   :  { %v623_v14 = vmax.f32 %v566_v12, 0.0 }
 0x257   :  { %v647_v15 = vpack.c.bf16 %v623_v14, %v622_v13 }
 0x259   :  { %801 = vmatmul.bf16.gmra.mxu1 %v647_v15  ;;  %890 = vmatmul.bf16.gmra.mxu2 %v647_v15 }
 0x25a   :  { %v568_v16 = vpop.f32.mrf.mxu0 }
 0x25b   :  { %v569_v18 = vadd.f32 %v2236_v5, %v568_v16 }
 0x25d   :  { %v624_v23 = vmax.f32 %v569_v18, 0.0 }
 0x262   :  { %v570_v19 = vpop.f32.mrf.mxu0 }
 0x263   :  { %v571_v20 = vadd.f32 %v2236_v5, %v570_v19 }
 0x265   :  { %v625_v24 = vmax.f32 %v571_v20, 0.0 }
 0x266   :  { %v767_v25 = vpop.f32.mrf.mxu1 }
 0x267   :  { %v768_v27 = vadd.f32 %v767_v25, %v2267_v22  ;;  %v648_v29 = vpack.c.bf16 %v625_v24, %v624_v23 }
 0x269   :  { %v936_v30 = vmax.f32 %v768_v27, 0.0  ;;  %806 = vmatmul.bf16.gmra.mxu1 %v648_v29  ;;  %895 = vmatmul.bf16.gmra.mxu2 %v648_v29 }
 0x26a   :  { %v573_v38 = vpop.f32.mrf.mxu0 }
 0x26b   :  { %1000 = vst [vmem:[#allocation8] sm:$0xff] %v936_v30  ;;  %v574_v43 = vadd.f32 %v2236_v5, %v573_v38 }
 0x26c   :  { %v856_v39 = vpop.f32.mrf.mxu2 }
 0x26d   :  { %v857_v40 = vadd.f32 %v856_v39, %v2270_v31  ;;  %v626_v48 = vmax.f32 %v574_v43, 0.0 }
 0x26e   :  { %v769_v41 = vpop.f32.mrf.mxu1 }
 0x26f   :  { %v937_v42 = vmax.f32 %v857_v40, 0.0  ;;  %v770_v26 = vadd.f32 %v769_v41, %v2267_v22 }
 0x271   :  { %1001 = vst [vmem:[#allocation8 + $0x8] sm:$0xff] %v937_v42  ;;  %v938_v28 = vmax.f32 %v770_v26, 0.0 }
 0x272   :  { %v575_v44 = vpop.f32.mrf.mxu0 }
 0x273   :  { %1002 = vst [vmem:[#allocation8 + $0x10] sm:$0xff] %v938_v28  ;;  %v1065_v45 = vmax.f32 %v936_v30, %v938_v28  ;;  %v576_v46 = vadd.f32 %v2236_v5, %v575_v44 }
 0x274   :  { %v858_v47 = vpop.f32.mrf.mxu2 }
 0x275   :  { %v627_v49 = vmax.f32 %v576_v46, 0.0  ;;  %v859_v21 = vadd.f32 %v858_v47, %v2270_v31 }
 0x276   :  { %v772_v50 = vpop.f32.mrf.mxu1 }
 0x277   :  { %v939_v51 = vmax.f32 %v859_v21, 0.0  ;;  %v773_v52 = vadd.f32 %v772_v50, %v2267_v22  ;;  %v649_v53 = vpack.c.bf16 %v627_v49, %v626_v48 }
 0x279   :  { %1003 = vst [vmem:[#allocation8 + $0x18] sm:$0xff] %v939_v51  ;;  %v1086_v32 = vmax.f32 %v937_v42, %v939_v51  ;;  %v940_v54 = vmax.f32 %v773_v52, 0.0  ;;  %811 = vmatmul.bf16.gmra.mxu1 %v649_v53  ;;  %900 = vmatmul.bf16.gmra.mxu2 %v649_v53 }
 0x27a   :  { %v578_v33 = vpop.f32.mrf.mxu0 }
 0x27b   :  { %1004 = vst [vmem:[#allocation8 + $0x20] sm:$0xff] %v940_v54  ;;  %v1066_v55 = vmax.f32 %v1065_v45, %v940_v54  ;;  %v579_v58 = vadd.f32 %v2236_v5, %v578_v33 }
 0x27c   :  { %v861_v34 = vpop.f32.mrf.mxu2 }
 0x27d   :  { %v862_v35 = vadd.f32 %v861_v34, %v2270_v31  ;;  %v628_v0 = vmax.f32 %v579_v58, 0.0 }
 0x27e   :  { %v774_v36 = vpop.f32.mrf.mxu1 }
 0x27f   :  { %v941_v57 = vmax.f32 %v862_v35, 0.0  ;;  %v775_v37 = vadd.f32 %v774_v36, %v2267_v22 }
 0x281   :  { %1005 = vst [vmem:[#allocation8 + $0x28] sm:$0xff] %v941_v57  ;;  %v1087_v59 = vmax.f32 %v1086_v32, %v941_v57  ;;  %v942_v60 = vmax.f32 %v775_v37, 0.0 }
 0x282   :  { %v580_v61 = vpop.f32.mrf.mxu0 }
 0x283   :  { %1006 = vst [vmem:[#allocation8 + $0x30] sm:$0xff] %v942_v60  ;;  %v1067_v62 = vmax.f32 %v1066_v55, %v942_v60  ;;  %v581_v56 = vadd.f32 %v2236_v5, %v580_v61 }
 0x284   :  { %v863_v63 = vpop.f32.mrf.mxu2 }
 0x285   :  { %v629_v1 = vmax.f32 %v581_v56, 0.0  ;;  %v864_v2 = vadd.f32 %v863_v63, %v2270_v31 }
 0x286   :  { %v777_v3 = vpop.f32.mrf.mxu1 }
 0x287   :  { %v943_v4 = vmax.f32 %v864_v2, 0.0  ;;  %v778_v6 = vadd.f32 %v777_v3, %v2267_v22  ;;  %v650_v7 = vpack.c.bf16 %v629_v1, %v628_v0 }
 0x289   :  { %1007 = vst [vmem:[#allocation8 + $0x38] sm:$0xff] %v943_v4  ;;  %v1088_v8 = vmax.f32 %v1087_v59, %v943_v4  ;;  %v944_v9 = vmax.f32 %v778_v6, 0.0  ;;  %816 = vmatmul.bf16.gmra.mxu1 %v650_v7  ;;  %905 = vmatmul.bf16.gmra.mxu2 %v650_v7 }
 0x28a   :  { %v583_v10 = vpop.f32.mrf.mxu0 }
 0x28b   :  { %1008 = vst [vmem:[#allocation8 + $0x40] sm:$0xff] %v944_v9  ;;  %v1068_v11 = vmax.f32 %v1067_v62, %v944_v9  ;;  %v584_v17 = vadd.f32 %v2236_v5, %v583_v10 }
 0x28c   :  { %v866_v12 = vpop.f32.mrf.mxu2 }
 0x28d   :  { %v867_v13 = vadd.f32 %v866_v12, %v2270_v31  ;;  %v630_v27 = vmax.f32 %v584_v17, 0.0 }
 0x28e   :  { %v779_v14 = vpop.f32.mrf.mxu1 }
 0x28f   :  { %v945_v15 = vmax.f32 %v867_v13, 0.0  ;;  %v780_v16 = vadd.f32 %v779_v14, %v2267_v22 }
 0x291   :  { %1009 = vst [vmem:[#allocation8 + $0x48] sm:$0xff] %v945_v15  ;;  %v1089_v18 = vmax.f32 %v1088_v8, %v945_v15  ;;  %v946_v19 = vmax.f32 %v780_v16, 0.0 }
 0x292   :  { %v585_v20 = vpop.f32.mrf.mxu0 }
 0x293   :  { %1010 = vst [vmem:[#allocation8 + $0x50] sm:$0xff] %v946_v19  ;;  %v1069_v23 = vmax.f32 %v1068_v11, %v946_v19  ;;  %v586_v24 = vadd.f32 %v2236_v5, %v585_v20 }
 0x294   :  { %v868_v25 = vpop.f32.mrf.mxu2 }
 0x295   :  { %v631_v29 = vmax.f32 %v586_v24, 0.0  ;;  %v869_v30 = vadd.f32 %v868_v25, %v2270_v31 }
 0x296   :  { %v782_v38 = vpop.f32.mrf.mxu1 }
 0x297   :  { %v947_v39 = vmax.f32 %v869_v30, 0.0  ;;  %v783_v40 = vadd.f32 %v782_v38, %v2267_v22  ;;  %v651_v41 = vpack.c.bf16 %v631_v29, %v630_v27 }
 0x299   :  { %1011 = vst [vmem:[#allocation8 + $0x58] sm:$0xff] %v947_v39  ;;  %v1090_v42 = vmax.f32 %v1089_v18, %v947_v39  ;;  %v948_v26 = vmax.f32 %v783_v40, 0.0  ;;  %821 = vmatmul.bf16.gmra.mxu1 %v651_v41  ;;  %910 = vmatmul.bf16.gmra.mxu2 %v651_v41 }
 0x29a   :  { %v588_v43 = vpop.f32.mrf.mxu0 }
 0x29b   :  { %1012 = vst [vmem:[#allocation8 + $0x60] sm:$0xff] %v948_v26  ;;  %v1070_v28 = vmax.f32 %v1069_v23, %v948_v26  ;;  %v589_v49 = vadd.f32 %v2236_v5, %v588_v43 }
 0x29c   :  { %v871_v44 = vpop.f32.mrf.mxu2 }
 0x29d   :  { %v872_v45 = vadd.f32 %v871_v44, %v2270_v31  ;;  %v632_v54 = vmax.f32 %v589_v49, 0.0 }
 0x29e   :  { %v784_v46 = vpop.f32.mrf.mxu1 }
 0x29f   :  { %v949_v47 = vmax.f32 %v872_v45, 0.0  ;;  %v785_v48 = vadd.f32 %v784_v46, %v2267_v22 }
 0x2a1   :  { %1013 = vst [vmem:[#allocation8 + $0x68] sm:$0xff] %v949_v47  ;;  %v1091_v21 = vmax.f32 %v1090_v42, %v949_v47  ;;  %v950_v50 = vmax.f32 %v785_v48, 0.0 }
 0x2a2   :  { %v590_v51 = vpop.f32.mrf.mxu0 }
 0x2a3   :  { %1014 = vst [vmem:[#allocation8 + $0x70] sm:$0xff] %v950_v50  ;;  %v1071_v52 = vmax.f32 %v1070_v28, %v950_v50  ;;  %v591_v53 = vadd.f32 %v2236_v5, %v590_v51 }
 0x2a4   :  { %v873_v32 = vpop.f32.mrf.mxu2 }
 0x2a5   :  { %v633_v33 = vmax.f32 %v591_v53, 0.0  ;;  %v874_v55 = vadd.f32 %v873_v32, %v2270_v31 }
 0x2a6   :  { %v787_v34 = vpop.f32.mrf.mxu1 }
 0x2a7   :  { %v652_v35 = vpack.c.bf16 %v633_v33, %v632_v54  ;;  %v951_v36 = vmax.f32 %v874_v55, 0.0  ;;  %v788_v57 = vadd.f32 %v787_v34, %v2267_v22 }
 0x2a9   :  { %1015 = vst [vmem:[#allocation8 + $0x78] sm:$0xff] %v951_v36  ;;  %v1092_v37 = vmax.f32 %v1091_v21, %v951_v36  ;;  %v952_v58 = vmax.f32 %v788_v57, 0.0  ;;  %826 = vmatmul.bf16.gmra.mxu1 %v652_v35  ;;  %915 = vmatmul.bf16.gmra.mxu2 %v652_v35 }
 0x2aa   :  { %v593_v59 = vpop.f32.mrf.mxu0 }
 0x2ab   :  { %1016 = vst [vmem:[#allocation8 + $0x80] sm:$0xff] %v952_v58  ;;  %v1072_v60 = vmax.f32 %v1071_v52, %v952_v58  ;;  %v594_v1 = vadd.f32 %v2236_v5, %v593_v59 }
 0x2ac   :  { %v876_v61 = vpop.f32.mrf.mxu2 }
 0x2ad   :  { %v877_v62 = vadd.f32 %v876_v61, %v2270_v31  ;;  %v634_v9 = vmax.f32 %v594_v1, 0.0 }
 0x2ae   :  { %v789_v56 = vpop.f32.mrf.mxu1 }
 0x2af   :  { %v953_v63 = vmax.f32 %v877_v62, 0.0  ;;  %v790_v0 = vadd.f32 %v789_v56, %v2267_v22 }
 0x2b1   :  { %1017 = vst [vmem:[#allocation8 + $0x88] sm:$0xff] %v953_v63  ;;  %v1093_v2 = vmax.f32 %v1092_v37, %v953_v63  ;;  %v954_v3 = vmax.f32 %v790_v0, 0.0 }
 0x2b2   :  { %v595_v4 = vpop.f32.mrf.mxu0 }
 0x2b3   :  { %1018 = vst [vmem:[#allocation8 + $0x90] sm:$0xff] %v954_v3  ;;  %v1073_v6 = vmax.f32 %v1072_v60, %v954_v3  ;;  %v596_v7 = vadd.f32 %v2236_v5, %v595_v4 }
 0x2b4   :  { %v878_v8 = vpop.f32.mrf.mxu2 }
 0x2b5   :  { %v635_v10 = vmax.f32 %v596_v7, 0.0  ;;  %v879_v11 = vadd.f32 %v878_v8, %v2270_v31 }
 0x2b6   :  { %v792_v12 = vpop.f32.mrf.mxu1 }
 0x2b7   :  { %v653_v13 = vpack.c.bf16 %v635_v10, %v634_v9  ;;  %v955_v14 = vmax.f32 %v879_v11, 0.0  ;;  %v793_v15 = vadd.f32 %v792_v12, %v2267_v22 }
 0x2b9   :  { %1019 = vst [vmem:[#allocation8 + $0x98] sm:$0xff] %v955_v14  ;;  %v1094_v16 = vmax.f32 %v1093_v2, %v955_v14  ;;  %v956_v17 = vmax.f32 %v793_v15, 0.0  ;;  %831 = vmatmul.bf16.gmra.mxu1 %v653_v13  ;;  %920 = vmatmul.bf16.gmra.mxu2 %v653_v13 }
 0x2ba   :  { %v598_v18 = vpop.f32.mrf.mxu0 }
 0x2bb   :  { %1020 = vst [vmem:[#allocation8 + $0xa0] sm:$0xff] %v956_v17  ;;  %v1074_v19 = vmax.f32 %v1073_v6, %v956_v17  ;;  %v599_v29 = vadd.f32 %v2236_v5, %v598_v18 }
 0x2bc   :  { %v881_v20 = vpop.f32.mrf.mxu2 }
 0x2bd   :  { %v882_v23 = vadd.f32 %v881_v20, %v2270_v31  ;;  %v636_v26 = vmax.f32 %v599_v29, 0.0 }
 0x2be   :  { %v794_v24 = vpop.f32.mrf.mxu1 }
 0x2bf   :  { %v957_v25 = vmax.f32 %v882_v23, 0.0  ;;  %v795_v27 = vadd.f32 %v794_v24, %v2267_v22 }
 0x2c1   :  { %1021 = vst [vmem:[#allocation8 + $0xa8] sm:$0xff] %v957_v25  ;;  %v1095_v30 = vmax.f32 %v1094_v16, %v957_v25  ;;  %v958_v38 = vmax.f32 %v795_v27, 0.0 }
 0x2c2   :  { %v600_v39 = vpop.f32.mrf.mxu0 }
 0x2c3   :  { %1022 = vst [vmem:[#allocation8 + $0xb0] sm:$0xff] %v958_v38  ;;  %v1075_v40 = vmax.f32 %v1074_v19, %v958_v38  ;;  %v601_v41 = vadd.f32 %v2236_v5, %v600_v39 }
 0x2c4   :  { %v883_v42 = vpop.f32.mrf.mxu2 }
 0x2c5   :  { %v637_v43 = vmax.f32 %v601_v41, 0.0  ;;  %v884_v28 = vadd.f32 %v883_v42, %v2270_v31 }
 0x2c6   :  { %v797_v44 = vpop.f32.mrf.mxu1 }
 0x2c7   :  { %v959_v45 = vmax.f32 %v884_v28, 0.0  ;;  %v798_v46 = vadd.f32 %v797_v44, %v2267_v22  ;;  %v654_v47 = vpack.c.bf16 %v637_v43, %v636_v26 }
 0x2c9   :  { %1023 = vst [vmem:[#allocation8 + $0xb8] sm:$0xff] %v959_v45  ;;  %v1096_v48 = vmax.f32 %v1095_v30, %v959_v45  ;;  %v960_v49 = vmax.f32 %v798_v46, 0.0  ;;  %836 = vmatmul.bf16.vlgmr.msra.gmra.mxu3 %v654_v47 }
 0x2ca   :  { %v603_v21 = vpop.f32.mrf.mxu0 }
 0x2cb   :  { %1024 = vst [vmem:[#allocation8 + $0xc0] sm:$0xff] %v960_v49  ;;  %v1076_v50 = vmax.f32 %v1075_v40, %v960_v49  ;;  %v604_v33 = vadd.f32 %v2236_v5, %v603_v21 }
 0x2cc   :  { %v886_v51 = vpop.f32.mrf.mxu2 }
 0x2cd   :  { %v887_v52 = vadd.f32 %v886_v51, %v2270_v31  ;;  %v638_v58 = vmax.f32 %v604_v33, 0.0 }
 0x2ce   :  { %v799_v53 = vpop.f32.mrf.mxu1 }
 0x2cf   :  { %v961_v32 = vmax.f32 %v887_v52, 0.0  ;;  %v800_v54 = vadd.f32 %v799_v53, %v2267_v22 }
 0x2d1   :  { %1025 = vst [vmem:[#allocation8 + $0xc8] sm:$0xff] %v961_v32  ;;  %v1097_v55 = vmax.f32 %v1096_v48, %v961_v32  ;;  %v962_v34 = vmax.f32 %v800_v54, 0.0 }
 0x2d2   :  { %v605_v35 = vpop.f32.mrf.mxu0 }
 0x2d3   :  { %1026 = vst [vmem:[#allocation8 + $0xd0] sm:$0xff] %v962_v34  ;;  %v1077_v36 = vmax.f32 %v1076_v50, %v962_v34  ;;  %v606_v57 = vadd.f32 %v2236_v5, %v605_v35 }
 0x2d4   :  { %v888_v37 = vpop.f32.mrf.mxu2 }
 0x2d5   :  { %v639_v59 = vmax.f32 %v606_v57, 0.0  ;;  %v889_v60 = vadd.f32 %v888_v37, %v2270_v31 }
 0x2d6   :  { %v802_v61 = vpop.f32.mrf.mxu1 }
 0x2d7   :  { %v963_v62 = vmax.f32 %v889_v60, 0.0  ;;  %v803_v56 = vadd.f32 %v802_v61, %v2267_v22  ;;  %v655_v63 = vpack.c.bf16 %v639_v59, %v638_v58 }
 0x2d9   :  { %1027 = vst [vmem:[#allocation8 + $0xd8] sm:$0xff] %v963_v62  ;;  %v1098_v0 = vmax.f32 %v1097_v55, %v963_v62  ;;  %v964_v1 = vmax.f32 %v803_v56, 0.0  ;;  %841 = vmatmul.bf16.gmra.mxu3 %v655_v63 }
 0x2db   :  { %1028 = vst [vmem:[#allocation8 + $0xe0] sm:$0xff] %v964_v1  ;;  %v1078_v2 = vmax.f32 %v1077_v36, %v964_v1 }
 0x2dc   :  { %v891_v3 = vpop.f32.mrf.mxu2 }
 0x2dd   :  { %v892_v4 = vadd.f32 %v891_v3, %v2270_v31 }
 0x2de   :  { %v804_v5 = vpop.f32.mrf.mxu1 }
 0x2df   :  { %v965_v6 = vmax.f32 %v892_v4, 0.0  ;;  %v805_v7 = vadd.f32 %v804_v5, %v2267_v22 }
 0x2e1   :  { %1029 = vst [vmem:[#allocation8 + $0xe8] sm:$0xff] %v965_v6  ;;  %v1099_v8 = vmax.f32 %v1098_v0, %v965_v6  ;;  %v966_v9 = vmax.f32 %v805_v7, 0.0 }
 0x2e3   :  { %1030 = vst [vmem:[#allocation8 + $0xf0] sm:$0xff] %v966_v9  ;;  %v1079_v10 = vmax.f32 %v1078_v2, %v966_v9 }
 0x2e4   :  { %v893_v11 = vpop.f32.mrf.mxu2 }
 0x2e5   :  { %v1080_v12 = vrot.slane %v1079_v10, 4  ;;  %v894_v13 = vadd.f32 %v893_v11, %v2270_v31 }
 0x2e6   :  { %v807_v14 = vpop.f32.mrf.mxu1 }
 0x2e7   :  { %v1081_v15 = vmax.f32 %v1079_v10, %v1080_v12  ;;  %v967_v16 = vmax.f32 %v894_v13, 0.0  ;;  %v808_v17 = vadd.f32 %v807_v14, %v2267_v22 }
 0x2e9   :  { %1031 = vst [vmem:[#allocation8 + $0xf8] sm:$0xff] %v967_v16  ;;  %v1100_v18 = vmax.f32 %v1099_v8, %v967_v16  ;;  %v968_v19 = vmax.f32 %v808_v17, 0.0  ;;  %925 = vmatmul.bf16.vlgmr.msrb.gmra.mxu3 %v654_v47  ;;  %v1082_v20 = vrot.slane %v1081_v15, 2 }
 0x2eb   :  { %v1101_v23 = vrot.slane %v1100_v18, 4  ;;  %1032 = vst [vmem:[#allocation8 + $0x100] sm:$0xff] %v968_v19  ;;  %v1083_v30 = vmax.f32 %v1081_v15, %v1082_v20 }
 0x2ec   :  { %v896_v24 = vpop.f32.mrf.mxu2 }
 0x2ed   :  { %v1102_v25 = vmax.f32 %v1100_v18, %v1101_v23  ;;  %v897_v27 = vadd.f32 %v896_v24, %v2270_v31  ;;  %v1084_v26 = vrot.slane %v1083_v30, 1 }
 0x2ee   :  { %v809_v29 = vpop.f32.mrf.mxu1 }
 0x2ef   :  { %v1103_v38 = vrot.slane %v1102_v25, 2  ;;  %v969_v39 = vmax.f32 %v897_v27, 0.0  ;;  %v810_v40 = vadd.f32 %v809_v29, %v2267_v22  ;;  %v1085_v48 = vmax.f32 %v1083_v30, %v1084_v26 }
 0x2f1   :  { %v1104_v41 = vmax.f32 %v1102_v25, %v1103_v38  ;;  %1033 = vst [vmem:[#allocation8 + $0x108] sm:$0xff] %v969_v39  ;;  %v970_v42 = vmax.f32 %v810_v40, 0.0 }
 0x2f3   :  { %v1105_v43 = vrot.slane %v1104_v41, 1  ;;  %1034 = vst [vmem:[#allocation8 + $0x110] sm:$0xff] %v970_v42  ;;  %v1107_v28 = vmax.f32 %v968_v19, %v970_v42 }
 0x2f4   :  { %v898_v44 = vpop.f32.mrf.mxu2 }
 0x2f5   :  { %v1106_v45 = vmax.f32 %v1104_v41, %v1105_v43  ;;  %v899_v46 = vadd.f32 %v898_v44, %v2270_v31 }
 0x2f6   :  { %v812_v47 = vpop.f32.mrf.mxu1 }
 0x2f7   :  { %v1153_v49 = vrot.slane %v1106_v45, 6  ;;  %v971_v21 = vmax.f32 %v899_v46, 0.0  ;;  %v813_v50 = vadd.f32 %v812_v47, %v2267_v22 }
 0x2f9   :  { %v2323_v51 = vsel %vm1155_vm1, %v1085_v48, %v1153_v49  ;;  %1035 = vst [vmem:[#allocation8 + $0x118] sm:$0xff] %v971_v21  ;;  %v1128_v52 = vmax.f32 %v969_v39, %v971_v21  ;;  %v972_v53 = vmax.f32 %v813_v50, 0.0  ;;  %930 = vmatmul.bf16.gmra.mxu3 %v655_v63 }
 0x2fb   :  { %1036 = vst [vmem:[#allocation8 + $0x120] sm:$0xff] %v972_v53  ;;  %v1108_v32 = vmax.f32 %v1107_v28, %v972_v53 }
 0x2fc   :  { %v901_v54 = vpop.f32.mrf.mxu2 }
 0x2fd   :  { %v902_v33 = vadd.f32 %v901_v54, %v2270_v31 }
 0x2fe   :  { %v814_v55 = vpop.f32.mrf.mxu1 }
 0x2ff   :  { %v973_v34 = vmax.f32 %v902_v33, 0.0  ;;  %v815_v35 = vadd.f32 %v814_v55, %v2267_v22 }
 0x301   :  { %1037 = vst [vmem:[#allocation8 + $0x128] sm:$0xff] %v973_v34  ;;  %v1129_v36 = vmax.f32 %v1128_v52, %v973_v34  ;;  %v974_v57 = vmax.f32 %v815_v35, 0.0 }
 0x303   :  { %1038 = vst [vmem:[#allocation8 + $0x130] sm:$0xff] %v974_v57  ;;  %v1109_v37 = vmax.f32 %v1108_v32, %v974_v57 }
 0x304   :  { %v903_v58 = vpop.f32.mrf.mxu2 }
 0x305   :  { %v904_v59 = vadd.f32 %v903_v58, %v2270_v31 }
 0x306   :  { %v817_v60 = vpop.f32.mrf.mxu1 }
 0x307   :  { %v975_v61 = vmax.f32 %v904_v59, 0.0  ;;  %v818_v62 = vadd.f32 %v817_v60, %v2267_v22 }
 0x309   :  { %1039 = vst [vmem:[#allocation8 + $0x138] sm:$0xff] %v975_v61  ;;  %v1130_v56 = vmax.f32 %v1129_v36, %v975_v61  ;;  %v976_v63 = vmax.f32 %v818_v62, 0.0 }
 0x30b   :  { %1040 = vst [vmem:[#allocation8 + $0x140] sm:$0xff] %v976_v63  ;;  %v1110_v0 = vmax.f32 %v1109_v37, %v976_v63 }
 0x30c   :  { %v906_v1 = vpop.f32.mrf.mxu2 }
 0x30d   :  { %v907_v2 = vadd.f32 %v906_v1, %v2270_v31 }
 0x30e   :  { %v819_v3 = vpop.f32.mrf.mxu1 }
 0x30f   :  { %v977_v4 = vmax.f32 %v907_v2, 0.0  ;;  %v820_v5 = vadd.f32 %v819_v3, %v2267_v22 }
 0x311   :  { %1041 = vst [vmem:[#allocation8 + $0x148] sm:$0xff] %v977_v4  ;;  %v1131_v6 = vmax.f32 %v1130_v56, %v977_v4  ;;  %v978_v7 = vmax.f32 %v820_v5, 0.0  ;;  %v1632_v4 = vld [vmem:[#allocation6 + $0x70] sm:$0xf]  ;;  %v1737_v5 = vld [vmem:[#allocation6 + $0x74] sm:$0xf0] }
 0x313   :  { %1042 = vst [vmem:[#allocation8 + $0x150] sm:$0xff] %v978_v7  ;;  %v1111_v8 = vmax.f32 %v1110_v0, %v978_v7  ;;  %v1624_v7 = vld [vmem:[#allocation6 + $0x60] sm:$0xf] }
 0x314   :  { %v908_v9 = vpop.f32.mrf.mxu2 }
 0x315   :  { %v909_v10 = vadd.f32 %v908_v9, %v2270_v31 }
 0x316   :  { %v822_v11 = vpop.f32.mrf.mxu1 }
 0x317   :  { %v979_v12 = vmax.f32 %v909_v10, 0.0  ;;  %v823_v13 = vadd.f32 %v822_v11, %v2267_v22 }
 0x319   :  { %1043 = vst [vmem:[#allocation8 + $0x158] sm:$0xff] %v979_v12  ;;  %v1132_v14 = vmax.f32 %v1131_v6, %v979_v12  ;;  %v980_v15 = vmax.f32 %v823_v13, 0.0  ;;  %v1633_v6 = vor.u32 %v1737_v5, %v1632_v4  ;;  %v1616_v13 = vld [vmem:[#allocation6 + $0x50] sm:$0xf]  ;;  %v1672_v4 = vld [vmem:[#allocation6 + $0xc0] sm:$0xf] }
 0x31a   :  { %v1664_v5 = vld [vmem:[#allocation6 + $0xb0] sm:$0xf] }
 0x31b   :  { %1044 = vst [vmem:[#allocation8 + $0x160] sm:$0xff] %v980_v15  ;;  %v1112_v16 = vmax.f32 %v1111_v8, %v980_v15  ;;  %1384 = vmatpush.bf16.msra.mxu3 %v1633_v6  ;;  %v1735_v8 = vld [vmem:[#allocation6 + $0x64] sm:$0xf0]  ;;  %v1745_v6 = vld [vmem:[#allocation6 + $0xb4] sm:$0xf0] }
 0x31c   :  { %v911_v17 = vpop.f32.mrf.mxu2  ;;  %v1625_v10 = vor.u32 %v1735_v8, %v1624_v7 }
 0x31d   :  { %v912_v18 = vadd.f32 %v911_v17, %v2270_v31  ;;  %v1608_v17 = vld [vmem:[#allocation6 + $0x40] sm:$0xf] }
 0x31e   :  { %v824_v19 = vpop.f32.mrf.mxu1 }
 0x31f   :  { %v981_v20 = vmax.f32 %v912_v18, 0.0  ;;  %v825_v23 = vadd.f32 %v824_v19, %v2267_v22  ;;  %1385 = vmatpush.bf16.msra.mxu3 %v1625_v10  ;;  %v1731_v18 = vld [vmem:[#allocation6 + $0x44] sm:$0xf0] }
 0x321   :  { %1045 = vst [vmem:[#allocation8 + $0x168] sm:$0xff] %v981_v20  ;;  %v1133_v24 = vmax.f32 %v1132_v14, %v981_v20  ;;  %v982_v25 = vmax.f32 %v825_v23, 0.0  ;;  %v1733_v14 = vld [vmem:[#allocation6 + $0x54] sm:$0xf0]  ;;  %v1609_v20 = vor.u32 %v1731_v18, %v1608_v17 }
 0x322   :  { %v1617_v15 = vor.u32 %v1733_v14, %v1616_v13 }
 0x323   :  { %1046 = vst [vmem:[#allocation8 + $0x170] sm:$0xff] %v982_v25  ;;  %v1113_v27 = vmax.f32 %v1112_v16, %v982_v25  ;;  %v1922_v16 = vmov -inf   ;;  %v1600_v25 = vld [vmem:[#allocation6 + $0x30] sm:$0xf] }
 0x324   :  { %v913_v29 = vpop.f32.mrf.mxu2  ;;  %1386 = vmatpush.bf16.msra.mxu3 %v1617_v15  ;;  %73 = vst [vmem:[#allocation2] sm:$0xf] %v1922_v16  ;;  %v1741_v15 = vld [vmem:[#allocation6 + $0x94] sm:$0xf0] }
 0x325   :  { %v914_v30 = vadd.f32 %v913_v29, %v2270_v31 }
 0x326   :  { %v827_v38 = vpop.f32.mrf.mxu1 }
 0x327   :  { %v983_v39 = vmax.f32 %v914_v30, 0.0  ;;  %v828_v40 = vadd.f32 %v827_v38, %v2267_v22  ;;  %v1592_v30 = vld [vmem:[#allocation6 + $0x20] sm:$0xf]  ;;  %v1727_v38 = vld [vmem:[#allocation6 + $0x24] sm:$0xf0] }
 0x328   :  { %1387 = vmatpush.bf16.msra.mxu3 %v1609_v20  ;;  %v1640_v20 = vld [vmem:[#allocation6 + $0x80] sm:$0xf] }
 0x329   :  { %1047 = vst [vmem:[#allocation8 + $0x178] sm:$0xff] %v983_v39  ;;  %v1134_v41 = vmax.f32 %v1133_v24, %v983_v39  ;;  %v984_v42 = vmax.f32 %v828_v40, 0.0  ;;  %v1593_v40 = vor.u32 %v1727_v38, %v1592_v30 }
 0x32b   :  { %1048 = vst [vmem:[#allocation8 + $0x180] sm:$0xff] %v984_v42  ;;  %v1114_v26 = vmax.f32 %v1113_v27, %v984_v42  ;;  %v1729_v27 = vld [vmem:[#allocation6 + $0x34] sm:$0xf0] }
 0x32c   :  { %v916_v43 = vpop.f32.mrf.mxu2  ;;  %v1601_v29 = vor.u32 %v1729_v27, %v1600_v25 }
 0x32d   :  { %v917_v28 = vadd.f32 %v916_v43, %v2270_v31  ;;  %v1725_v43 = vld [vmem:[#allocation6 + $0x14] sm:$0xf0] }
 0x32e   :  { %v829_v44 = vpop.f32.mrf.mxu1  ;;  %1388 = vmatpush.bf16.msra.mxu3 %v1601_v29 }
 0x32f   :  { %v985_v45 = vmax.f32 %v917_v28, 0.0  ;;  %v830_v46 = vadd.f32 %v829_v44, %v2267_v22  ;;  %v1723_v44 = vld [vmem:[#allocation6 + $0x4] sm:$0xf0] }
 0x331   :  { %1049 = vst [vmem:[#allocation8 + $0x188] sm:$0xff] %v985_v45  ;;  %v1135_v47 = vmax.f32 %v1134_v41, %v985_v45  ;;  %v986_v48 = vmax.f32 %v830_v46, 0.0 }
 0x332   :  { %1389 = vmatpush.bf16.msra.mxu3 %v1593_v40 }
 0x333   :  { %1050 = vst [vmem:[#allocation8 + $0x190] sm:$0xff] %v986_v48  ;;  %v1115_v49 = vmax.f32 %v1114_v26, %v986_v48  ;;  %v1584_v26 = vld [vmem:[#allocation6 + $0x10] sm:$0xf]  ;;  %v1753_v48 = vld [vmem:[#allocation6 + $0xf4] sm:$0xf0] }
 0x334   :  { %v918_v21 = vpop.f32.mrf.mxu2  ;;  %v1585_v28 = vor.u32 %v1725_v43, %v1584_v26 }
 0x335   :  { %v919_v50 = vadd.f32 %v918_v21, %v2270_v31 }
 0x336   :  { %v832_v52 = vpop.f32.mrf.mxu1  ;;  %1390 = vmatpush.bf16.msra.mxu3 %v1585_v28  ;;  %v1064_v28 = vld [vmem:[#allocation2] sm:$0xf] }
 0x337   :  { %v987_v53 = vmax.f32 %v919_v50, 0.0  ;;  %v833_v32 = vadd.f32 %v832_v52, %v2267_v22  ;;  %v1688_v52 = vld [vmem:[#allocation6 + $0xe0] sm:$0xf] }
 0x339   :  { %1051 = vst [vmem:[#allocation8 + $0x198] sm:$0xff] %v987_v53  ;;  %v2341_v54 = vmax.f32 %v1135_v47, %v987_v53  ;;  %v988_v33 = vmax.f32 %v833_v32, 0.0  ;;  %v1696_v47 = vld [vmem:[#allocation6 + $0xf0] sm:$0xf]  ;;  %v1751_v53 = vld [vmem:[#allocation6 + $0xe4] sm:$0xf0] }
 0x33a   :  { %v1697_v21 = vor.u32 %v1753_v48, %v1696_v47  ;;  %v1736_v48 = vld [vmem:[#allocation6 + $0x74] sm:$0xf] }
 0x33b   :  { %1052 = vst [vmem:[#allocation8 + $0x1a0] sm:$0xff] %v988_v33  ;;  %v1116_v55 = vmax.f32 %v1115_v49, %v988_v33  ;;  %v1689_v33 = vor.u32 %v1751_v53, %v1688_v52  ;;  %v1734_v53 = vld [vmem:[#allocation6 + $0x64] sm:$0xf] }
 0x33c   :  { %v921_v34 = vpop.f32.mrf.mxu2 }
 0x33d   :  { %v2344_v35 = vadd.f32 %v921_v34, %v2270_v31 }
 0x33e   :  { %v834_v36 = vpop.f32.mrf.mxu1 }
 0x33f   :  { %v989_v57 = vmax.f32 %v2344_v35, 0.0  ;;  %v835_v37 = vadd.f32 %v834_v36, %v2267_v22  ;;  %v1680_v36 = vld [vmem:[#allocation6 + $0xd0] sm:$0xf]  ;;  %v1656_v35 = vld [vmem:[#allocation6 + $0xa0] sm:$0xf] }
 0x341   :  { %1053 = vst [vmem:[#allocation8 + $0x1a8] sm:$0xff] %v989_v57  ;;  %v990_v58 = vmax.f32 %v835_v37, 0.0  ;;  %v1749_v37 = vld [vmem:[#allocation6 + $0xd4] sm:$0xf0] }
 0x343   :  { %1054 = vst [vmem:[#allocation8 + $0x1b0] sm:$0xff] %v990_v58  ;;  %v2350_v59 = vmax.f32 %v1116_v55, %v990_v58 }
 0x344   :  { %v923_v60 = vpop.f32.mrf.mxu2 }
 0x345   :  { %v2353_v61 = vadd.f32 %v923_v60, %v2270_v31 }
 0x347   :  { %v991_v62 = vmax.f32 %v2353_v61, 0.0 }
 0x349   :  { %1055 = vst [vmem:[#allocation8 + $0x1b8] sm:$0xff] %v991_v62 }
 0x34c   :  { %v837_v56 = vpop.f32.mrf.mxu3 }
 0x34d   :  { %v2359_v63 = vadd.f32 %v837_v56, %v2267_v22  ;;  %v1681_v56 = vor.u32 %v1749_v37, %v1680_v36  ;;  %v1730_v36 = vld [vmem:[#allocation6 + $0x44] sm:$0xf]  ;;  %v1610_v37 = vld [vmem:[#allocation6 + $0x48] sm:$0xf0] }
 0x34f   :  { %v992_v0 = vmax.f32 %v2359_v63, 0.0  ;;  %v1137_v63 = vmax.f32 %v2341_v54, %v989_v57 }
 0x351   :  { %1056 = vst [vmem:[#allocation8 + $0x1c0] sm:$0xff] %v992_v0  ;;  %v1118_v32 = vmax.f32 %v2350_v59, %v992_v0  ;;  %v1747_v59 = vld [vmem:[#allocation6 + $0xc4] sm:$0xf0]  ;;  %v1138_v0 = vmax.f32 %v1137_v63, %v991_v62  ;;  %v1648_v62 = vld [vmem:[#allocation6 + $0x90] sm:$0xf] }
 0x354   :  { %v839_v1 = vpop.f32.mrf.mxu3 }
 0x355   :  { %v840_v2 = vadd.f32 %v839_v1, %v2267_v22 }
 0x357   :  { %v994_v3 = vmax.f32 %v840_v2, 0.0 }
 0x359   :  { %1058 = vst [vmem:[#allocation8 + $0x1d0] sm:$0xff] %v994_v3  ;;  %v1119_v55 = vmax.f32 %v1118_v32, %v994_v3  ;;  %v1673_v3 = vor.u32 %v1747_v59, %v1672_v4  ;;  %v1626_v32 = vld [vmem:[#allocation6 + $0x68] sm:$0xf0]  ;;  %v1726_v4 = vld [vmem:[#allocation6 + $0x24] sm:$0xf] }
 0x35a   :  { %v1594_v59 = vld [vmem:[#allocation6 + $0x28] sm:$0xf0] }
 0x35c   :  { %v842_v9 = vpop.f32.mrf.mxu3 }
 0x35d   :  { %v843_v11 = vadd.f32 %v842_v9, %v2267_v22  ;;  %v1665_v9 = vor.u32 %v1745_v6, %v1664_v5  ;;  %v1586_v5 = vld [vmem:[#allocation6 + $0x18] sm:$0xf0] }
 0x35f   :  { %v996_v12 = vmax.f32 %v843_v11, 0.0  ;;  %v1743_v11 = vld [vmem:[#allocation6 + $0xa4] sm:$0xf0] }
 0x360   :  { %v1657_v61 = vor.u32 %v1743_v11, %v1656_v35 }
 0x361   :  { %1060 = vst [vmem:[#allocation8 + $0x1e0] sm:$0xff] %v996_v12  ;;  %v1120_v58 = vmax.f32 %v1119_v55, %v996_v12  ;;  %v1618_v55 = vld [vmem:[#allocation6 + $0x58] sm:$0xf0] }
 0x364   :  { %v844_v19 = vpop.f32.mrf.mxu3 }
 0x365   :  { %v845_v23 = vadd.f32 %v844_v19, %v2267_v22  ;;  %v1576_v22 = vld [vmem:[#allocation6] sm:$0xf]  ;;  %v1649_v19 = vor.u32 %v1741_v15, %v1648_v62  ;;  %v1746_v62 = vld [vmem:[#allocation6 + $0xc4] sm:$0xf]  ;;  %v1674_v15 = vld [vmem:[#allocation6 + $0xc8] sm:$0xf0] }
 0x366   :  { %v1577_v46 = vor.u32 %v1723_v44, %v1576_v22 }
 0x367   :  { %v998_v24 = vmax.f32 %v845_v23, 0.0  ;;  %v1739_v23 = vld [vmem:[#allocation6 + $0x84] sm:$0xf0] }
 0x368   :  { %1391 = vmatpush.bf16.msra.mxu3 %v1577_v46 }
 0x369   :  { %1062 = vst [vmem:[#allocation8 + $0x1f0] sm:$0xff] %v998_v24  ;;  %v1121_v1 = vmax.f32 %v1120_v58, %v998_v24  ;;  %v1613_v58 = vor.u32 %v1730_v36, %v1610_v37 }
 0x36b   :  { %v1122_v7 = vrot.slane %v1121_v1, 4 }
 0x36c   :  { %v926_v39 = vpop.f32.mrf.mxu3  ;;  %1397 = vmatpush.bf16.msrb.mxu3 %v1697_v21 }
 0x36d   :  { %v927_v41 = vadd.f32 %v926_v39, %v2270_v31  ;;  %v1123_v12 = vmax.f32 %v1121_v1, %v1122_v7  ;;  %v1722_v7 = vld [vmem:[#allocation6 + $0x4] sm:$0xf] }
 0x36f   :  { %v993_v42 = vmax.f32 %v927_v41, 0.0  ;;  %v1124_v17 = vrot.slane %v1123_v12, 2 }
 0x370   :  { %1398 = vmatpush.bf16.msrb.mxu3 %v1689_v33  ;;  %v1629_v33 = vor.u32 %v1734_v53, %v1626_v32 }
 0x371   :  { %1057 = vst [vmem:[#allocation8 + $0x1c8] sm:$0xff] %v993_v42  ;;  %v1139_v8 = vmax.f32 %v1138_v0, %v993_v42  ;;  %v1125_v25 = vmax.f32 %v1123_v12, %v1124_v17  ;;  %v1597_v0 = vor.u32 %v1726_v4, %v1594_v59  ;;  %v1744_v17 = vld [vmem:[#allocation6 + $0xb4] sm:$0xf] }
 0x373   :  { %v1126_v30 = vrot.slane %v1125_v25, 1 }
 0x374   :  { %v928_v45 = vpop.f32.mrf.mxu3  ;;  %1399 = vmatpush.bf16.msrb.mxu3 %v1681_v56  ;;  %v1602_v56 = vld [vmem:[#allocation6 + $0x38] sm:$0xf0] }
 0x375   :  { %v929_v49 = vadd.f32 %v928_v45, %v2270_v31  ;;  %v1127_v40 = vmax.f32 %v1125_v25, %v1126_v30  ;;  %v1740_v25 = vld [vmem:[#allocation6 + $0x94] sm:$0xf]  ;;  %v1642_v30 = vld [vmem:[#allocation6 + $0x88] sm:$0xf0] }
 0x377   :  { %v995_v50 = vmax.f32 %v929_v49, 0.0  ;;  %v1634_v49 = vld [vmem:[#allocation6 + $0x78] sm:$0xf0] }
 0x378   :  { %1400 = vmatpush.bf16.msrb.mxu3 %v1673_v3  ;;  %v1724_v3 = vld [vmem:[#allocation6 + $0x14] sm:$0xf] }
 0x379   :  { %1059 = vst [vmem:[#allocation8 + $0x1d8] sm:$0xff] %v995_v50  ;;  %v1140_v54 = vmax.f32 %v1139_v8, %v995_v50  ;;  %v1637_v50 = vor.u32 %v1736_v48, %v1634_v49  ;;  %v1589_v6 = vor.u32 %v1724_v3, %v1586_v5  ;;  %v1578_v8 = vld [vmem:[#allocation6 + $0x8] sm:$0xf0] }
 0x37a   :  { %v1581_v35 = vor.u32 %v1722_v7, %v1578_v8 }
 0x37c   :  { %v931_v34 = vpop.f32.mrf.mxu3  ;;  %1401 = vmatpush.bf16.msrb.mxu3 %v1665_v9  ;;  %v1752_v9 = vld [vmem:[#allocation6 + $0xf4] sm:$0xf] }
 0x37d   :  { %v932_v60 = vadd.f32 %v931_v34, %v2270_v31 }
 0x37f   :  { %v997_v2 = vmax.f32 %v932_v60, 0.0  ;;  %v1728_v60 = vld [vmem:[#allocation6 + $0x34] sm:$0xf] }
 0x380   :  { %1402 = vmatpush.bf16.msrb.mxu3 %v1657_v61  ;;  %v1605_v1 = vor.u32 %v1728_v60, %v1602_v56 }
 0x381   :  { %1061 = vst [vmem:[#allocation8 + $0x1e8] sm:$0xff] %v997_v2  ;;  %v1141_v13 = vmax.f32 %v1140_v54, %v997_v2  ;;  %v1750_v54 = vld [vmem:[#allocation6 + $0xe4] sm:$0xf] }
 0x384   :  { %v933_v10 = vpop.f32.mrf.mxu3  ;;  %1403 = vmatpush.bf16.msrb.mxu3 %v1649_v19 }
 0x385   :  { %v934_v57 = vadd.f32 %v933_v10, %v2270_v31  ;;  %v1641_v31 = vor.u32 %v1739_v23, %v1640_v20  ;;  %v1698_v10 = vld [vmem:[#allocation6 + $0xf8] sm:$0xf0]  ;;  %v1742_v20 = vld [vmem:[#allocation6 + $0xa4] sm:$0xf]  ;;  %v1658_v23 = vld [vmem:[#allocation6 + $0xa8] sm:$0xf0] }
 0x386   :  { %v1701_v11 = vor.u32 %v1752_v9, %v1698_v10 }
 0x387   :  { %v999_v14 = vmax.f32 %v934_v57, 0.0  ;;  %v1690_v57 = vld [vmem:[#allocation6 + $0xe8] sm:$0xf0] }
 0x388   :  { %1404 = vmatpush.bf16.msrb.mxu3 %v1641_v31  ;;  %v1693_v12 = vor.u32 %v1750_v54, %v1690_v57 }
 0x389   :  { %1063 = vst [vmem:[#allocation8 + $0x1f8] sm:$0xff] %v999_v14  ;;  %v1142_v16 = vmax.f32 %v1141_v13, %v999_v14  ;;  %v1748_v13 = vld [vmem:[#allocation6 + $0xd4] sm:$0xf]  ;;  %v1682_v14 = vld [vmem:[#allocation6 + $0xd8] sm:$0xf0] }
 0x38a   :  { %v1685_v61 = vor.u32 %v1748_v13, %v1682_v14  ;;  %1454 = dma.vmem_to_hbm [thread:$0]  %s1447_s30, 8192, %s1449_s13, [#allocation5], %s1924_s14, %s1924_s14, %s1925_s1  }
 0x38b   :  { %v1143_v18 = vrot.slane %v1142_v16, 4 }
 0x38d   :  { %v1144_v24 = vmax.f32 %v1142_v16, %v1143_v18  ;;  %v1677_v16 = vor.u32 %v1746_v62, %v1674_v15  ;;  %v1666_v18 = vld [vmem:[#allocation6 + $0xb8] sm:$0xf0] }
 0x38e   :  { %v1669_v19 = vor.u32 %v1744_v17, %v1666_v18 }
 0x38f   :  { %v1145_v27 = vrot.slane %v1144_v24, 2 }
 0x391   :  { %v1146_v29 = vmax.f32 %v1144_v24, %v1145_v27  ;;  %v1661_v24 = vor.u32 %v1742_v20, %v1658_v23  ;;  %v1650_v27 = vld [vmem:[#allocation6 + $0x98] sm:$0xf0] }
 0x392   :  { %v1653_v31 = vor.u32 %v1740_v25, %v1650_v27 }
 0x393   :  { %v1147_v38 = vrot.slane %v1146_v29, 1 }
 0x395   :  { %v1148_v39 = vmax.f32 %v1146_v29, %v1147_v38  ;;  %v1738_v29 = vld [vmem:[#allocation6 + $0x84] sm:$0xf] }
 0x396   :  { %v1645_v38 = vor.u32 %v1738_v29, %v1642_v30 }
 0x397   :  { %v1154_v41 = vrot.slane %v1148_v39, 6 }
 0x399   :  { %v1157_v42 = vsel %vm1155_vm1, %v1127_v40, %v1154_v41 }
 0x39a   :  { %v1162_v26 = vrot.slane %v1157_v42, 7 }
 0x39c   :  { %v1164_v43 = vsel %vm1163_vm2, %v1162_v26, %v2323_v51  ;;  %v1732_v51 = vld [vmem:[#allocation6 + $0x54] sm:$0xf] }
 0x39d   :  { %v1166_v22 = vsel %vm1165_vm3, %v1162_v26, %v1164_v43  ;;  %v1621_v34 = vor.u32 %v1732_v51, %v1618_v55 }
 0x39e   :  { %v1168_v44 = vsel %vm1167_vm4, %v1162_v26, %v1166_v22 }
 0x39f   :  { %v1170_v45 = vsel %vm1169_vm5, %v1162_v26, %v1168_v44 }
 0x3a0   :  { %v1172_v46 = vmax.f32 %v1064_v28, %v1170_v45  ;;  %v1218_v28 = vld [vmem:[%s2395_s8] sm:$0x3] }
 0x3a1   :  { %v1221_v22 = vperm.slane %v1218_v28, 1  ;;  %v1220_v44 = vperm.slane %v1218_v28, 0 }
 0x3a2   :  { %1173 = vst [vmem:[#allocation2] sm:$0xf] %v1172_v46 }
 0x3a9   :  { %v1177_v47 = vld [vmem:[#allocation2] sm:$0xf] }
 0x3aa   :  { %1179 = vst [vmem:[#allocation1] ss:$4 sm:$0xff] %v1177_v47 }
 0x3b1   :  { %v1180_v21 = vld.sshfl [vmem:[#allocation1] sm:$0xff pattern:$0x73625140]  ;;  %v1181_v63 = vld.sshfl [vmem:[#allocation1 + $0x8] sm:$0xff pattern:$0x73625140] }
 0x3b2   :  { %v1184_v52 = vpack.c.bf16 %v1180_v21, %v1180_v21  ;;  %v1185_v2 = vpack.c.bf16 %v1181_v63, %v1181_v63 }
 0x3b4   :  { %1392 = vmatmul.bf16.vlgmr.msra.gmra.mxu3 %v1184_v52 }
 0x3b5   :  { %1410 = vmatpush.bf16.msra.mxu3 %v1637_v50 }
 0x3b9   :  { %1411 = vmatpush.bf16.msra.mxu3 %v1629_v33 }
 0x3bd   :  { %1412 = vmatpush.bf16.msra.mxu3 %v1621_v34 }
 0x3c1   :  { %1413 = vmatpush.bf16.msra.mxu3 %v1613_v58 }
 0x3c4   :  { %1405 = vmatmul.bf16.vlgmr.msrb.gmra.mxu3 %v1185_v2 }
 0x3c5   :  { %1414 = vmatpush.bf16.msra.mxu3 %v1605_v1 }
 0x3c9   :  { %1415 = vmatpush.bf16.msra.mxu3 %v1597_v0 }
 0x3cd   :  { %1416 = vmatpush.bf16.msra.mxu3 %v1589_v6 }
 0x3d1   :  { %1417 = vmatpush.bf16.msra.mxu3 %v1581_v35 }
 0x3d4   :  { %1418 = vmatmul.bf16.vlgmr.msra.gmra.mxu3 %v1184_v52 }
 0x3d5   :  { %1423 = vmatpush.bf16.msrb.mxu3 %v1701_v11 }
 0x3d9   :  { %1424 = vmatpush.bf16.msrb.mxu3 %v1693_v12 }
 0x3dd   :  { %1425 = vmatpush.bf16.msrb.mxu3 %v1685_v61 }
 0x3e1   :  { %1426 = vmatpush.bf16.msrb.mxu3 %v1677_v16 }
 0x3e5   :  { %1427 = vmatpush.bf16.msrb.mxu3 %v1669_v19 }
 0x3e9   :  { %1428 = vmatpush.bf16.msrb.mxu3 %v1661_v24 }
 0x3ed   :  { %1429 = vmatpush.bf16.msrb.mxu3 %v1653_v31 }
 0x3f1   :  { %1430 = vmatpush.bf16.msrb.mxu3 %v1645_v38 }
 0x3f4   :  { %1431 = vmatmul.bf16.vlgmr.msrb.gmra.mxu3 %v1185_v2 }
 0x437   :  { %v1393_v39 = vpop.f32.mrf.mxu3 }
 0x438   :  { %v1394_v47 = vadd.f32 %v1393_v39, %v1220_v44 }
 0x43f   :  { %v1395_v40 = vpop.f32.mrf.mxu3 }
 0x447   :  { %v1406_v41 = vpop.f32.mrf.mxu3 }
 0x448   :  { %v1407_v49 = vadd.f32 %v1406_v41, %v1394_v47 }
 0x44f   :  { %v1408_v42 = vpop.f32.mrf.mxu3 }
 0x457   :  { %v1419_v26 = vpop.f32.mrf.mxu3 }
 0x458   :  { %v1420_v45 = vadd.f32 %v1419_v26, %v1221_v22 }
 0x45f   :  { %v1421_v43 = vpop.f32.mrf.mxu3 }
 0x477   :  { %v1432_v46 = vpop.f32.mrf.mxu3 }
 0x478   :  { %v1433_v48 = vadd.f32 %v1432_v46, %v1420_v45 }
 0x47a   :  { %v1438_v21 = vrot.slane %v1433_v48, 6 }
 0x47c   :  { %v1439_v50 = vsel %vm1155_vm1, %v1407_v49, %v1438_v21 }
 0x47d   :  { %1441 = vst [vmem:[#allocation9] sm:$0xf] %v1439_v50 }
 0x47e   :  { %1465 = dma.vmem_to_hbm [thread:$0]  %s1461_s17, 64, %s1463_s18, [#allocation10]  }
 0x47f   :  { %v1434_v52 = vpop.f32.mrf.mxu3 }
 0x480   :  { %1909 = dma.done.wait [#allocation5], 8192  }
 0x481   :  { %1910 = vsyncadd [#allocation5], 4294959104 }
 0x482   :  { %1911 = dma.done.wait [#allocation10], 64  }
 0x483   :  { %1912 = vsyncadd [#allocation10], 4294967232 }
 0x484   :  { %1474 = vsyncpa [#allocation4], 1 }
 0x485   :  { %1475 = vsyncpa [#allocation7], 1 }
 0x486   :  { %1476 = vsyncpa [#allocation5], 1 }
 0x487   :  { %1477 = vsyncpa [#allocation10], 1 }

</bundles_post_ra>
